<compile_context>
chip_gen: v7x
topology: tpu7x:2x2x1
jax: 0.10.0
libtpu: 0.0.40
codegen_flags: <defaults>
</compile_context>

<pallas_src>
import functools

import jax
import jax.numpy as jnp
import numpy as np
from jax.experimental import pallas as pl
from jax.experimental.pallas import tpu as pltpu

GATE_PAD = 128  # lanes per gate block == padded hidden width (one full vreg lane-span)


def lstm_kernel(x_ref, wih_ref, whh_ref, b_ref, wf_ref, bf_ref, out_ref, xg_sc,
                *, batch, seq_len, unroll):
    """x_ref: (T*B, I) time-major flattened input.  out_ref: (B, OUT_pad)."""
    GP = GATE_PAD
    B = batch

    # ---- Prologue: input projection for ALL timesteps in one MXU matmul -----
    # xg_sc[t*B:(t+1)*B, :] = x_t @ W_ih^T + (b_ih + b_hh), gate-block padded.
    xg_sc[...] = (
        jnp.dot(x_ref[...], wih_ref[...], preferred_element_type=jnp.float32)
        + b_ref[...]                       # bias broadcast happens exactly once
    )

    # ---- Serial recurrence: one matmul (h @ W_hh^T) per step -----------------
    def step(t, carry):
        h, c = carry                       # (B, GP) each; lanes H..GP-1 stay zero
        base = pl.multiple_of(t * B, B)    # B is a multiple of 8 (sublane tile)
        whh = whh_ref[...]                 # read per-step: not pinned across the loop
        gates = xg_sc[pl.ds(base, B), :] + jnp.dot(
            h, whh, preferred_element_type=jnp.float32)           # (B, 4*GP)
        # Full-vreg, lane-aligned gate views (no sub-vreg lane extraction).
        i_g = jax.nn.sigmoid(gates[:, 0 * GP:1 * GP])
        f_g = jax.nn.sigmoid(gates[:, 1 * GP:2 * GP])
        g_g = jnp.tanh(gates[:, 2 * GP:3 * GP])
        o_g = jax.nn.sigmoid(gates[:, 3 * GP:4 * GP])
        c_new = f_g * c + i_g * g_g
        h_new = o_g * jnp.tanh(c_new)
        return h_new, c_new

    h0 = jnp.zeros((B, GP), jnp.float32)
    c0 = jnp.zeros((B, GP), jnp.float32)
    h_last, _ = jax.lax.fori_loop(0, seq_len, step, (h0, c0), unroll=unroll)

    # ---- Fused FC head (W1@W2 pre-folded in the wrapper), lane-dense output --
    out = jnp.dot(h_last, wf_ref[...], preferred_element_type=jnp.float32) + bf_ref[...]
    out_ref[...] = out.astype(out_ref.dtype)


def _round_up(n, m):
    return ((n + m - 1) // m) * m


def _pad_gate_cols(w, H, GP):
    """(.., 4H) -> (.., 4*GP): gate k moved to columns [k*GP, k*GP+H), rest zero."""
    parts = []
    pad_cfg = [(0, 0)] * (w.ndim - 1) + [(0, GP - H)]
    for k in range(4):
        parts.append(jnp.pad(w[..., k * H:(k + 1) * H], pad_cfg))
    return jnp.concatenate(parts, axis=-1)


def lstm_model_forward(x, params):
    """Pallas equivalent of LSTMModel.forward.  x: (B, T, I) float32."""
    B, T, I = x.shape
    H = params["w_hh_t"].shape[0]
    out_size = params["w2_t"].shape[1]
    GP = GATE_PAD
    assert H <= GP, "toy-size path assumes hidden_size <= 128"

    # --- wrapper-side layout plumbing (cheap XLA ops, outside the hot loop) ---
    # Pad batch to a full sublane tile; lay x out time-major + flattened so
    # timestep t is the contiguous row block [t*B_pad, (t+1)*B_pad).
    B_pad = _round_up(max(B, 8), 8)
    x_p = jnp.pad(x, ((0, B_pad - B), (0, 0), (0, 0)))
    x_flat = jnp.transpose(x_p, (1, 0, 2)).reshape(T * B_pad, I)

    # Gate-block lane padding: each gate gets its own full 128-lane block so all
    # in-kernel gate slices are full-vreg views.  Padded rows/cols are zero.
    wih_p = _pad_gate_cols(params["w_ih_t"], H, GP)                      # (I, 4*GP)
    whh_p = jnp.pad(_pad_gate_cols(params["w_hh_t"], H, GP),
                    ((0, GP - H), (0, 0)))                               # (GP, 4*GP)
    b_p = _pad_gate_cols(params["b"], H, GP)                             # (1, 4*GP)

    # Fuse the two activation-free Linear layers offline.
    w_fused = params["w1_t"] @ params["w2_t"]                            # (H, out)
    b_fused = params["b1"] @ params["w2_t"] + params["b2"]               # (1, out)
    out_pad = _round_up(out_size, 128)
    wf_p = jnp.pad(w_fused, ((0, GP - H), (0, out_pad - out_size)))      # (GP, out_pad)
    bf_p = jnp.pad(b_fused, ((0, 0), (0, out_pad - out_size)))           # (1, out_pad)

    unroll = True if T <= 16 else 8
    kernel = functools.partial(lstm_kernel, batch=B_pad, seq_len=T, unroll=unroll)
    vmem = pl.BlockSpec(memory_space=pltpu.MemorySpace.VMEM)

    out = pl.pallas_call(
        kernel,
        out_shape=jax.ShapeDtypeStruct((B_pad, out_pad), jnp.float32),
        in_specs=[vmem] * 6,
        out_specs=vmem,
        scratch_shapes=[
            pltpu.VMEM((T * B_pad, 4 * GP), jnp.float32),  # hoisted gate pre-activations
        ],
        compiler_params=pltpu.CompilerParams(vmem_limit_bytes=32 << 20),
    )(x_flat, wih_p, whh_p, b_p, wf_p, bf_p)

    return out[:B, :out_size]


def init_params(key, input_size, hidden_size, intermediate_size, output_size):
    """Deterministic synthetic init (PyTorch-style uniform bounds)."""
    ks = jax.random.split(key, 8)
    H = hidden_size
    bound_lstm = 1.0 / np.sqrt(H)
    bound_fc1 = 1.0 / np.sqrt(H)
    bound_fc2 = 1.0 / np.sqrt(intermediate_size)
    u = lambda k, shape, b: jax.random.uniform(k, shape, jnp.float32, -b, b)

    w_ih = u(ks[0], (4 * H, input_size), bound_lstm)
    w_hh = u(ks[1], (4 * H, H), bound_lstm)
    b_ih = u(ks[2], (4 * H,), bound_lstm)
    b_hh = u(ks[3], (4 * H,), bound_lstm)
    w1 = u(ks[4], (intermediate_size, H), bound_fc1)
    b1 = u(ks[5], (intermediate_size,), bound_fc1)
    w2 = u(ks[6], (output_size, intermediate_size), bound_fc2)
    b2 = u(ks[7], (output_size,), bound_fc2)

    return {
        "w_ih_t": w_ih.T,                      # (I, 4H)
        "w_hh_t": w_hh.T,                      # (H, 4H)
        "b": (b_ih + b_hh)[None, :],           # (1, 4H)
        "w1_t": w1.T,                          # (H, inter)
        "b1": b1[None, :],                     # (1, inter)
        "w2_t": w2.T,                          # (inter, out)
        "b2": b2[None, :],                     # (1, out)
    }


def reference_forward(x, params):
    """Pure-JAX reference (mirrors nn.LSTM + two separate Linear layers)."""
    B, T, I = x.shape
    H = params["w_hh_t"].shape[0]

    def step(carry, x_t):
        h, c = carry
        gates = x_t @ params["w_ih_t"] + h @ params["w_hh_t"] + params["b"][0]
        i_g = jax.nn.sigmoid(gates[:, 0 * H:1 * H])
        f_g = jax.nn.sigmoid(gates[:, 1 * H:2 * H])
        g_g = jnp.tanh(gates[:, 2 * H:3 * H])
        o_g = jax.nn.sigmoid(gates[:, 3 * H:4 * H])
        c = f_g * c + i_g * g_g
        h = o_g * jnp.tanh(c)
        return (h, c), None

    h0 = jnp.zeros((B, H), jnp.float32)
    c0 = jnp.zeros((B, H), jnp.float32)
    (h_last, _), _ = jax.lax.scan(step, (h0, c0), jnp.transpose(x, (1, 0, 2)))
    inter = h_last @ params["w1_t"] + params["b1"][0]
    return inter @ params["w2_t"] + params["b2"][0]


if __name__ == "__main__":
    # Small shapes consistent with the module: batch=2, seq=8, input=8, hidden=32,
    # intermediate=16, output=4.
    B, T, I = 2, 8, 8
    H, INTER, OUT = 32, 16, 4

    key = jax.random.PRNGKey(0)
    k_x, k_p = jax.random.split(key)
    x = jax.random.normal(k_x, (B, T, I), dtype=jnp.float32)
    params = init_params(k_p, I, H, INTER, OUT)

    out = lstm_model_forward(x, params)
    out = jax.block_until_ready(out)

    ref = reference_forward(x, params)
    # Slightly loosened tolerance: the kernel uses the algebraically-fused FC head
    # (W1 @ W2 precomputed), which differs from the two-matmul reference only by
    # f32 rounding.
    np.testing.assert_allclose(np.asarray(out), np.asarray(ref), rtol=1e-4, atol=1e-5)

    print("KERNEL_OK")
</pallas_src>

<mosaic_0001>
module attributes {stable_mosaic.version = 11 : i64} {
  func.func @lstm_kernel(%arg0: memref<64x8xf32, #tpu.memory_space<vmem>>, %arg1: memref<8x512xf32, #tpu.memory_space<vmem>>, %arg2: memref<128x512xf32, #tpu.memory_space<vmem>>, %arg3: memref<1x512xf32, #tpu.memory_space<vmem>>, %arg4: memref<128x128xf32, #tpu.memory_space<vmem>>, %arg5: memref<1x128xf32, #tpu.memory_space<vmem>>, %arg6: memref<8x128xf32, #tpu.memory_space<vmem>>, %arg7: memref<64x512xf32, #tpu.memory_space<vmem>>) attributes {dimension_semantics = [], scalar_prefetch = 0 : i64, scratch_operands = 1 : i64, tpu.core_type = #tpu.core_type<tc>} {
    %c0 = arith.constant 0 : index
    %c0_0 = arith.constant 0 : index
    %0 = vector.load %arg0[%c0, %c0_0] : memref<64x8xf32, #tpu.memory_space<vmem>>, vector<64x8xf32>
    %c0_1 = arith.constant 0 : index
    %c0_2 = arith.constant 0 : index
    %1 = vector.load %arg1[%c0_1, %c0_2] : memref<8x512xf32, #tpu.memory_space<vmem>>, vector<8x512xf32>
    %cst = arith.constant dense<0.000000e+00> : vector<64x512xf32>
    %2 = tpu.matmul %0, %1, %cst {dimension_numbers = #tpu.dot_dimension_numbers<[1], [0], [0], [1], [0, 0, 1, 1], [], []>} : vector<64x8xf32>, vector<8x512xf32>, vector<64x512xf32> -> vector<64x512xf32>
    %c0_3 = arith.constant 0 : index
    %c0_4 = arith.constant 0 : index
    %3 = vector.load %arg3[%c0_3, %c0_4] : memref<1x512xf32, #tpu.memory_space<vmem>>, vector<1x512xf32>
    %4 = vector.broadcast %3 : vector<1x512xf32> to vector<64x512xf32>
    %5 = arith.addf %2, %4 : vector<64x512xf32>
    %c0_5 = arith.constant 0 : index
    %c0_6 = arith.constant 0 : index
    %6 = vector.load %arg7[%c0_5, %c0_6] : memref<64x512xf32, #tpu.memory_space<vmem>>, vector<64x512xf32>
    tpu.vector_store %arg7[%c0_5, %c0_6], %5 {strides = array<i32>} : memref<64x512xf32, #tpu.memory_space<vmem>>, vector<64x512xf32>,
    %cst_7 = arith.constant 0.000000e+00 : f32
    %7 = vector.broadcast %cst_7 : f32 to vector<8x128xf32>
    %cst_8 = arith.constant 0.000000e+00 : f32
    %8 = vector.broadcast %cst_8 : f32 to vector<8x128xf32>
    %c0_i32 = arith.constant 0 : i32
    %c8_i32 = arith.constant 8 : i32
    %9 = arith.muli %c0_i32, %c8_i32 : i32
    %10 = tpu.assume_multiple %9, 8 : i32
    %c0_9 = arith.constant 0 : index
    %c0_10 = arith.constant 0 : index
    %11 = vector.load %arg2[%c0_9, %c0_10] : memref<128x512xf32, #tpu.memory_space<vmem>>, vector<128x512xf32>
    %12 = arith.index_cast %10 : i32 to index
    %c0_11 = arith.constant 0 : index
    %13 = vector.load %arg7[%12, %c0_11] : memref<64x512xf32, #tpu.memory_space<vmem>>, vector<8x512xf32>
    %cst_12 = arith.constant dense<0.000000e+00> : vector<8x512xf32>
    %14 = tpu.matmul %7, %11, %cst_12 {dimension_numbers = #tpu.dot_dimension_numbers<[1], [0], [0], [1], [0, 0, 1, 1], [], []>} : vector<8x128xf32>, vector<128x512xf32>, vector<8x512xf32> -> vector<8x512xf32>
    %15 = arith.addf %13, %14 : vector<8x512xf32>
    %16 = vector.extract_strided_slice %15 {offsets = [0, 0], sizes = [8, 128], strides = [1, 1]} : vector<8x512xf32> to vector<8x128xf32>
    %17 = arith.negf %16 : vector<8x128xf32>
    %18 = math.exp %17 : vector<8x128xf32>
    %cst_13 = arith.constant 1.000000e+00 : f32
    %19 = vector.broadcast %cst_13 : f32 to vector<8x128xf32>
    %20 = arith.addf %19, %18 : vector<8x128xf32>
    %21 = arith.divf %19, %20 : vector<8x128xf32>
    %22 = vector.extract_strided_slice %15 {offsets = [0, 128], sizes = [8, 128], strides = [1, 1]} : vector<8x512xf32> to vector<8x128xf32>
    %23 = arith.negf %22 : vector<8x128xf32>
    %24 = math.exp %23 : vector<8x128xf32>
    %cst_14 = arith.constant 1.000000e+00 : f32
    %25 = vector.broadcast %cst_14 : f32 to vector<8x128xf32>
    %26 = arith.addf %25, %24 : vector<8x128xf32>
    %27 = arith.divf %25, %26 : vector<8x128xf32>
    %28 = vector.extract_strided_slice %15 {offsets = [0, 256], sizes = [8, 128], strides = [1, 1]} : vector<8x512xf32> to vector<8x128xf32>
    %29 = math.tanh %28 : vector<8x128xf32>
    %30 = vector.extract_strided_slice %15 {offsets = [0, 384], sizes = [8, 128], strides = [1, 1]} : vector<8x512xf32> to vector<8x128xf32>
    %31 = arith.negf %30 : vector<8x128xf32>
    %32 = math.exp %31 : vector<8x128xf32>
    %cst_15 = arith.constant 1.000000e+00 : f32
    %33 = vector.broadcast %cst_15 : f32 to vector<8x128xf32>
    %34 = arith.addf %33, %32 : vector<8x128xf32>
    %35 = arith.divf %33, %34 : vector<8x128xf32>
    %36 = arith.mulf %27, %8 : vector<8x128xf32>
    %37 = arith.mulf %21, %29 : vector<8x128xf32>
    %38 = arith.addf %36, %37 : vector<8x128xf32>
    %39 = math.tanh %38 : vector<8x128xf32>
    %40 = arith.mulf %35, %39 : vector<8x128xf32>
    %c1_i32 = arith.constant 1 : i32
    %c8_i32_16 = arith.constant 8 : i32
    %41 = arith.muli %c1_i32, %c8_i32_16 : i32
    %42 = tpu.assume_multiple %41, 8 : i32
    %c0_17 = arith.constant 0 : index
    %c0_18 = arith.constant 0 : index
    %43 = vector.load %arg2[%c0_17, %c0_18] : memref<128x512xf32, #tpu.memory_space<vmem>>, vector<128x512xf32>
    %44 = arith.index_cast %42 : i32 to index
    %c0_19 = arith.constant 0 : index
    %45 = vector.load %arg7[%44, %c0_19] : memref<64x512xf32, #tpu.memory_space<vmem>>, vector<8x512xf32>
    %cst_20 = arith.constant dense<0.000000e+00> : vector<8x512xf32>
    %46 = tpu.matmul %40, %43, %cst_20 {dimension_numbers = #tpu.dot_dimension_numbers<[1], [0], [0], [1], [0, 0, 1, 1], [], []>} : vector<8x128xf32>, vector<128x512xf32>, vector<8x512xf32> -> vector<8x512xf32>
    %47 = arith.addf %45, %46 : vector<8x512xf32>
    %48 = vector.extract_strided_slice %47 {offsets = [0, 0], sizes = [8, 128], strides = [1, 1]} : vector<8x512xf32> to vector<8x128xf32>
    %49 = arith.negf %48 : vector<8x128xf32>
    %50 = math.exp %49 : vector<8x128xf32>
    %cst_21 = arith.constant 1.000000e+00 : f32
    %51 = vector.broadcast %cst_21 : f32 to vector<8x128xf32>
    %52 = arith.addf %51, %50 : vector<8x128xf32>
    %53 = arith.divf %51, %52 : vector<8x128xf32>
    %54 = vector.extract_strided_slice %47 {offsets = [0, 128], sizes = [8, 128], strides = [1, 1]} : vector<8x512xf32> to vector<8x128xf32>
    %55 = arith.negf %54 : vector<8x128xf32>
    %56 = math.exp %55 : vector<8x128xf32>
    %cst_22 = arith.constant 1.000000e+00 : f32
    %57 = vector.broadcast %cst_22 : f32 to vector<8x128xf32>
    %58 = arith.addf %57, %56 : vector<8x128xf32>
    %59 = arith.divf %57, %58 : vector<8x128xf32>
    %60 = vector.extract_strided_slice %47 {offsets = [0, 256], sizes = [8, 128], strides = [1, 1]} : vector<8x512xf32> to vector<8x128xf32>
    %61 = math.tanh %60 : vector<8x128xf32>
    %62 = vector.extract_strided_slice %47 {offsets = [0, 384], sizes = [8, 128], strides = [1, 1]} : vector<8x512xf32> to vector<8x128xf32>
    %63 = arith.negf %62 : vector<8x128xf32>
    %64 = math.exp %63 : vector<8x128xf32>
    %cst_23 = arith.constant 1.000000e+00 : f32
    %65 = vector.broadcast %cst_23 : f32 to vector<8x128xf32>
    %66 = arith.addf %65, %64 : vector<8x128xf32>
    %67 = arith.divf %65, %66 : vector<8x128xf32>
    %68 = arith.mulf %59, %38 : vector<8x128xf32>
    %69 = arith.mulf %53, %61 : vector<8x128xf32>
    %70 = arith.addf %68, %69 : vector<8x128xf32>
    %71 = math.tanh %70 : vector<8x128xf32>
    %72 = arith.mulf %67, %71 : vector<8x128xf32>
    %c2_i32 = arith.constant 2 : i32
    %c8_i32_24 = arith.constant 8 : i32
    %73 = arith.muli %c2_i32, %c8_i32_24 : i32
    %74 = tpu.assume_multiple %73, 8 : i32
    %c0_25 = arith.constant 0 : index
    %c0_26 = arith.constant 0 : index
    %75 = vector.load %arg2[%c0_25, %c0_26] : memref<128x512xf32, #tpu.memory_space<vmem>>, vector<128x512xf32>
    %76 = arith.index_cast %74 : i32 to index
    %c0_27 = arith.constant 0 : index
    %77 = vector.load %arg7[%76, %c0_27] : memref<64x512xf32, #tpu.memory_space<vmem>>, vector<8x512xf32>
    %cst_28 = arith.constant dense<0.000000e+00> : vector<8x512xf32>
    %78 = tpu.matmul %72, %75, %cst_28 {dimension_numbers = #tpu.dot_dimension_numbers<[1], [0], [0], [1], [0, 0, 1, 1], [], []>} : vector<8x128xf32>, vector<128x512xf32>, vector<8x512xf32> -> vector<8x512xf32>
    %79 = arith.addf %77, %78 : vector<8x512xf32>
    %80 = vector.extract_strided_slice %79 {offsets = [0, 0], sizes = [8, 128], strides = [1, 1]} : vector<8x512xf32> to vector<8x128xf32>
    %81 = arith.negf %80 : vector<8x128xf32>
    %82 = math.exp %81 : vector<8x128xf32>
    %cst_29 = arith.constant 1.000000e+00 : f32
    %83 = vector.broadcast %cst_29 : f32 to vector<8x128xf32>
    %84 = arith.addf %83, %82 : vector<8x128xf32>
    %85 = arith.divf %83, %84 : vector<8x128xf32>
    %86 = vector.extract_strided_slice %79 {offsets = [0, 128], sizes = [8, 128], strides = [1, 1]} : vector<8x512xf32> to vector<8x128xf32>
    %87 = arith.negf %86 : vector<8x128xf32>
    %88 = math.exp %87 : vector<8x128xf32>
    %cst_30 = arith.constant 1.000000e+00 : f32
    %89 = vector.broadcast %cst_30 : f32 to vector<8x128xf32>
    %90 = arith.addf %89, %88 : vector<8x128xf32>
    %91 = arith.divf %89, %90 : vector<8x128xf32>
    %92 = vector.extract_strided_slice %79 {offsets = [0, 256], sizes = [8, 128], strides = [1, 1]} : vector<8x512xf32> to vector<8x128xf32>
    %93 = math.tanh %92 : vector<8x128xf32>
    %94 = vector.extract_strided_slice %79 {offsets = [0, 384], sizes = [8, 128], strides = [1, 1]} : vector<8x512xf32> to vector<8x128xf32>
    %95 = arith.negf %94 : vector<8x128xf32>
    %96 = math.exp %95 : vector<8x128xf32>
    %cst_31 = arith.constant 1.000000e+00 : f32
    %97 = vector.broadcast %cst_31 : f32 to vector<8x128xf32>
    %98 = arith.addf %97, %96 : vector<8x128xf32>
    %99 = arith.divf %97, %98 : vector<8x128xf32>
    %100 = arith.mulf %91, %70 : vector<8x128xf32>
    %101 = arith.mulf %85, %93 : vector<8x128xf32>
    %102 = arith.addf %100, %101 : vector<8x128xf32>
    %103 = math.tanh %102 : vector<8x128xf32>
    %104 = arith.mulf %99, %103 : vector<8x128xf32>
    %c3_i32 = arith.constant 3 : i32
    %c8_i32_32 = arith.constant 8 : i32
    %105 = arith.muli %c3_i32, %c8_i32_32 : i32
    %106 = tpu.assume_multiple %105, 8 : i32
    %c0_33 = arith.constant 0 : index
    %c0_34 = arith.constant 0 : index
    %107 = vector.load %arg2[%c0_33, %c0_34] : memref<128x512xf32, #tpu.memory_space<vmem>>, vector<128x512xf32>
    %108 = arith.index_cast %106 : i32 to index
    %c0_35 = arith.constant 0 : index
    %109 = vector.load %arg7[%108, %c0_35] : memref<64x512xf32, #tpu.memory_space<vmem>>, vector<8x512xf32>
    %cst_36 = arith.constant dense<0.000000e+00> : vector<8x512xf32>
    %110 = tpu.matmul %104, %107, %cst_36 {dimension_numbers = #tpu.dot_dimension_numbers<[1], [0], [0], [1], [0, 0, 1, 1], [], []>} : vector<8x128xf32>, vector<128x512xf32>, vector<8x512xf32> -> vector<8x512xf32>
    %111 = arith.addf %109, %110 : vector<8x512xf32>
    %112 = vector.extract_strided_slice %111 {offsets = [0, 0], sizes = [8, 128], strides = [1, 1]} : vector<8x512xf32> to vector<8x128xf32>
    %113 = arith.negf %112 : vector<8x128xf32>
    %114 = math.exp %113 : vector<8x128xf32>
    %cst_37 = arith.constant 1.000000e+00 : f32
    %115 = vector.broadcast %cst_37 : f32 to vector<8x128xf32>
    %116 = arith.addf %115, %114 : vector<8x128xf32>
    %117 = arith.divf %115, %116 : vector<8x128xf32>
    %118 = vector.extract_strided_slice %111 {offsets = [0, 128], sizes = [8, 128], strides = [1, 1]} : vector<8x512xf32> to vector<8x128xf32>
    %119 = arith.negf %118 : vector<8x128xf32>
    %120 = math.exp %119 : vector<8x128xf32>
    %cst_38 = arith.constant 1.000000e+00 : f32
    %121 = vector.broadcast %cst_38 : f32 to vector<8x128xf32>
    %122 = arith.addf %121, %120 : vector<8x128xf32>
    %123 = arith.divf %121, %122 : vector<8x128xf32>
    %124 = vector.extract_strided_slice %111 {offsets = [0, 256], sizes = [8, 128], strides = [1, 1]} : vector<8x512xf32> to vector<8x128xf32>
    %125 = math.tanh %124 : vector<8x128xf32>
    %126 = vector.extract_strided_slice %111 {offsets = [0, 384], sizes = [8, 128], strides = [1, 1]} : vector<8x512xf32> to vector<8x128xf32>
    %127 = arith.negf %126 : vector<8x128xf32>
    %128 = math.exp %127 : vector<8x128xf32>
    %cst_39 = arith.constant 1.000000e+00 : f32
    %129 = vector.broadcast %cst_39 : f32 to vector<8x128xf32>
    %130 = arith.addf %129, %128 : vector<8x128xf32>
    %131 = arith.divf %129, %130 : vector<8x128xf32>
    %132 = arith.mulf %123, %102 : vector<8x128xf32>
    %133 = arith.mulf %117, %125 : vector<8x128xf32>
    %134 = arith.addf %132, %133 : vector<8x128xf32>
    %135 = math.tanh %134 : vector<8x128xf32>
    %136 = arith.mulf %131, %135 : vector<8x128xf32>
    %c4_i32 = arith.constant 4 : i32
    %c8_i32_40 = arith.constant 8 : i32
    %137 = arith.muli %c4_i32, %c8_i32_40 : i32
    %138 = tpu.assume_multiple %137, 8 : i32
    %c0_41 = arith.constant 0 : index
    %c0_42 = arith.constant 0 : index
    %139 = vector.load %arg2[%c0_41, %c0_42] : memref<128x512xf32, #tpu.memory_space<vmem>>, vector<128x512xf32>
    %140 = arith.index_cast %138 : i32 to index
    %c0_43 = arith.constant 0 : index
    %141 = vector.load %arg7[%140, %c0_43] : memref<64x512xf32, #tpu.memory_space<vmem>>, vector<8x512xf32>
    %cst_44 = arith.constant dense<0.000000e+00> : vector<8x512xf32>
    %142 = tpu.matmul %136, %139, %cst_44 {dimension_numbers = #tpu.dot_dimension_numbers<[1], [0], [0], [1], [0, 0, 1, 1], [], []>} : vector<8x128xf32>, vector<128x512xf32>, vector<8x512xf32> -> vector<8x512xf32>
    %143 = arith.addf %141, %142 : vector<8x512xf32>
    %144 = vector.extract_strided_slice %143 {offsets = [0, 0], sizes = [8, 128], strides = [1, 1]} : vector<8x512xf32> to vector<8x128xf32>
    %145 = arith.negf %144 : vector<8x128xf32>
    %146 = math.exp %145 : vector<8x128xf32>
    %cst_45 = arith.constant 1.000000e+00 : f32
    %147 = vector.broadcast %cst_45 : f32 to vector<8x128xf32>
    %148 = arith.addf %147, %146 : vector<8x128xf32>
    %149 = arith.divf %147, %148 : vector<8x128xf32>
    %150 = vector.extract_strided_slice %143 {offsets = [0, 128], sizes = [8, 128], strides = [1, 1]} : vector<8x512xf32> to vector<8x128xf32>
    %151 = arith.negf %150 : vector<8x128xf32>
    %152 = math.exp %151 : vector<8x128xf32>
    %cst_46 = arith.constant 1.000000e+00 : f32
    %153 = vector.broadcast %cst_46 : f32 to vector<8x128xf32>
    %154 = arith.addf %153, %152 : vector<8x128xf32>
    %155 = arith.divf %153, %154 : vector<8x128xf32>
    %156 = vector.extract_strided_slice %143 {offsets = [0, 256], sizes = [8, 128], strides = [1, 1]} : vector<8x512xf32> to vector<8x128xf32>
    %157 = math.tanh %156 : vector<8x128xf32>
    %158 = vector.extract_strided_slice %143 {offsets = [0, 384], sizes = [8, 128], strides = [1, 1]} : vector<8x512xf32> to vector<8x128xf32>
    %159 = arith.negf %158 : vector<8x128xf32>
    %160 = math.exp %159 : vector<8x128xf32>
    %cst_47 = arith.constant 1.000000e+00 : f32
    %161 = vector.broadcast %cst_47 : f32 to vector<8x128xf32>
    %162 = arith.addf %161, %160 : vector<8x128xf32>
    %163 = arith.divf %161, %162 : vector<8x128xf32>
    %164 = arith.mulf %155, %134 : vector<8x128xf32>
    %165 = arith.mulf %149, %157 : vector<8x128xf32>
    %166 = arith.addf %164, %165 : vector<8x128xf32>
    %167 = math.tanh %166 : vector<8x128xf32>
    %168 = arith.mulf %163, %167 : vector<8x128xf32>
    %c5_i32 = arith.constant 5 : i32
    %c8_i32_48 = arith.constant 8 : i32
    %169 = arith.muli %c5_i32, %c8_i32_48 : i32
    %170 = tpu.assume_multiple %169, 8 : i32
    %c0_49 = arith.constant 0 : index
    %c0_50 = arith.constant 0 : index
    %171 = vector.load %arg2[%c0_49, %c0_50] : memref<128x512xf32, #tpu.memory_space<vmem>>, vector<128x512xf32>
    %172 = arith.index_cast %170 : i32 to index
    %c0_51 = arith.constant 0 : index
    %173 = vector.load %arg7[%172, %c0_51] : memref<64x512xf32, #tpu.memory_space<vmem>>, vector<8x512xf32>
    %cst_52 = arith.constant dense<0.000000e+00> : vector<8x512xf32>
    %174 = tpu.matmul %168, %171, %cst_52 {dimension_numbers = #tpu.dot_dimension_numbers<[1], [0], [0], [1], [0, 0, 1, 1], [], []>} : vector<8x128xf32>, vector<128x512xf32>, vector<8x512xf32> -> vector<8x512xf32>
    %175 = arith.addf %173, %174 : vector<8x512xf32>
    %176 = vector.extract_strided_slice %175 {offsets = [0, 0], sizes = [8, 128], strides = [1, 1]} : vector<8x512xf32> to vector<8x128xf32>
    %177 = arith.negf %176 : vector<8x128xf32>
    %178 = math.exp %177 : vector<8x128xf32>
    %cst_53 = arith.constant 1.000000e+00 : f32
    %179 = vector.broadcast %cst_53 : f32 to vector<8x128xf32>
    %180 = arith.addf %179, %178 : vector<8x128xf32>
    %181 = arith.divf %179, %180 : vector<8x128xf32>
    %182 = vector.extract_strided_slice %175 {offsets = [0, 128], sizes = [8, 128], strides = [1, 1]} : vector<8x512xf32> to vector<8x128xf32>
    %183 = arith.negf %182 : vector<8x128xf32>
    %184 = math.exp %183 : vector<8x128xf32>
    %cst_54 = arith.constant 1.000000e+00 : f32
    %185 = vector.broadcast %cst_54 : f32 to vector<8x128xf32>
    %186 = arith.addf %185, %184 : vector<8x128xf32>
    %187 = arith.divf %185, %186 : vector<8x128xf32>
    %188 = vector.extract_strided_slice %175 {offsets = [0, 256], sizes = [8, 128], strides = [1, 1]} : vector<8x512xf32> to vector<8x128xf32>
    %189 = math.tanh %188 : vector<8x128xf32>
    %190 = vector.extract_strided_slice %175 {offsets = [0, 384], sizes = [8, 128], strides = [1, 1]} : vector<8x512xf32> to vector<8x128xf32>
    %191 = arith.negf %190 : vector<8x128xf32>
    %192 = math.exp %191 : vector<8x128xf32>
    %cst_55 = arith.constant 1.000000e+00 : f32
    %193 = vector.broadcast %cst_55 : f32 to vector<8x128xf32>
    %194 = arith.addf %193, %192 : vector<8x128xf32>
    %195 = arith.divf %193, %194 : vector<8x128xf32>
    %196 = arith.mulf %187, %166 : vector<8x128xf32>
    %197 = arith.mulf %181, %189 : vector<8x128xf32>
    %198 = arith.addf %196, %197 : vector<8x128xf32>
    %199 = math.tanh %198 : vector<8x128xf32>
    %200 = arith.mulf %195, %199 : vector<8x128xf32>
    %c6_i32 = arith.constant 6 : i32
    %c8_i32_56 = arith.constant 8 : i32
    %201 = arith.muli %c6_i32, %c8_i32_56 : i32
    %202 = tpu.assume_multiple %201, 8 : i32
    %c0_57 = arith.constant 0 : index
    %c0_58 = arith.constant 0 : index
    %203 = vector.load %arg2[%c0_57, %c0_58] : memref<128x512xf32, #tpu.memory_space<vmem>>, vector<128x512xf32>
    %204 = arith.index_cast %202 : i32 to index
    %c0_59 = arith.constant 0 : index
    %205 = vector.load %arg7[%204, %c0_59] : memref<64x512xf32, #tpu.memory_space<vmem>>, vector<8x512xf32>
    %cst_60 = arith.constant dense<0.000000e+00> : vector<8x512xf32>
    %206 = tpu.matmul %200, %203, %cst_60 {dimension_numbers = #tpu.dot_dimension_numbers<[1], [0], [0], [1], [0, 0, 1, 1], [], []>} : vector<8x128xf32>, vector<128x512xf32>, vector<8x512xf32> -> vector<8x512xf32>
    %207 = arith.addf %205, %206 : vector<8x512xf32>
    %208 = vector.extract_strided_slice %207 {offsets = [0, 0], sizes = [8, 128], strides = [1, 1]} : vector<8x512xf32> to vector<8x128xf32>
    %209 = arith.negf %208 : vector<8x128xf32>
    %210 = math.exp %209 : vector<8x128xf32>
    %cst_61 = arith.constant 1.000000e+00 : f32
    %211 = vector.broadcast %cst_61 : f32 to vector<8x128xf32>
    %212 = arith.addf %211, %210 : vector<8x128xf32>
    %213 = arith.divf %211, %212 : vector<8x128xf32>
    %214 = vector.extract_strided_slice %207 {offsets = [0, 128], sizes = [8, 128], strides = [1, 1]} : vector<8x512xf32> to vector<8x128xf32>
    %215 = arith.negf %214 : vector<8x128xf32>
    %216 = math.exp %215 : vector<8x128xf32>
    %cst_62 = arith.constant 1.000000e+00 : f32
    %217 = vector.broadcast %cst_62 : f32 to vector<8x128xf32>
    %218 = arith.addf %217, %216 : vector<8x128xf32>
    %219 = arith.divf %217, %218 : vector<8x128xf32>
    %220 = vector.extract_strided_slice %207 {offsets = [0, 256], sizes = [8, 128], strides = [1, 1]} : vector<8x512xf32> to vector<8x128xf32>
    %221 = math.tanh %220 : vector<8x128xf32>
    %222 = vector.extract_strided_slice %207 {offsets = [0, 384], sizes = [8, 128], strides = [1, 1]} : vector<8x512xf32> to vector<8x128xf32>
    %223 = arith.negf %222 : vector<8x128xf32>
    %224 = math.exp %223 : vector<8x128xf32>
    %cst_63 = arith.constant 1.000000e+00 : f32
    %225 = vector.broadcast %cst_63 : f32 to vector<8x128xf32>
    %226 = arith.addf %225, %224 : vector<8x128xf32>
    %227 = arith.divf %225, %226 : vector<8x128xf32>
    %228 = arith.mulf %219, %198 : vector<8x128xf32>
    %229 = arith.mulf %213, %221 : vector<8x128xf32>
    %230 = arith.addf %228, %229 : vector<8x128xf32>
    %231 = math.tanh %230 : vector<8x128xf32>
    %232 = arith.mulf %227, %231 : vector<8x128xf32>
    %c7_i32 = arith.constant 7 : i32
    %c8_i32_64 = arith.constant 8 : i32
    %233 = arith.muli %c7_i32, %c8_i32_64 : i32
    %234 = tpu.assume_multiple %233, 8 : i32
    %c0_65 = arith.constant 0 : index
    %c0_66 = arith.constant 0 : index
    %235 = vector.load %arg2[%c0_65, %c0_66] : memref<128x512xf32, #tpu.memory_space<vmem>>, vector<128x512xf32>
    %236 = arith.index_cast %234 : i32 to index
    %c0_67 = arith.constant 0 : index
    %237 = vector.load %arg7[%236, %c0_67] : memref<64x512xf32, #tpu.memory_space<vmem>>, vector<8x512xf32>
    %cst_68 = arith.constant dense<0.000000e+00> : vector<8x512xf32>
    %238 = tpu.matmul %232, %235, %cst_68 {dimension_numbers = #tpu.dot_dimension_numbers<[1], [0], [0], [1], [0, 0, 1, 1], [], []>} : vector<8x128xf32>, vector<128x512xf32>, vector<8x512xf32> -> vector<8x512xf32>
    %239 = arith.addf %237, %238 : vector<8x512xf32>
    %240 = vector.extract_strided_slice %239 {offsets = [0, 0], sizes = [8, 128], strides = [1, 1]} : vector<8x512xf32> to vector<8x128xf32>
    %241 = arith.negf %240 : vector<8x128xf32>
    %242 = math.exp %241 : vector<8x128xf32>
    %cst_69 = arith.constant 1.000000e+00 : f32
    %243 = vector.broadcast %cst_69 : f32 to vector<8x128xf32>
    %244 = arith.addf %243, %242 : vector<8x128xf32>
    %245 = arith.divf %243, %244 : vector<8x128xf32>
    %246 = vector.extract_strided_slice %239 {offsets = [0, 128], sizes = [8, 128], strides = [1, 1]} : vector<8x512xf32> to vector<8x128xf32>
    %247 = arith.negf %246 : vector<8x128xf32>
    %248 = math.exp %247 : vector<8x128xf32>
    %cst_70 = arith.constant 1.000000e+00 : f32
    %249 = vector.broadcast %cst_70 : f32 to vector<8x128xf32>
    %250 = arith.addf %249, %248 : vector<8x128xf32>
    %251 = arith.divf %249, %250 : vector<8x128xf32>
    %252 = vector.extract_strided_slice %239 {offsets = [0, 256], sizes = [8, 128], strides = [1, 1]} : vector<8x512xf32> to vector<8x128xf32>
    %253 = math.tanh %252 : vector<8x128xf32>
    %254 = vector.extract_strided_slice %239 {offsets = [0, 384], sizes = [8, 128], strides = [1, 1]} : vector<8x512xf32> to vector<8x128xf32>
    %255 = arith.negf %254 : vector<8x128xf32>
    %256 = math.exp %255 : vector<8x128xf32>
    %cst_71 = arith.constant 1.000000e+00 : f32
    %257 = vector.broadcast %cst_71 : f32 to vector<8x128xf32>
    %258 = arith.addf %257, %256 : vector<8x128xf32>
    %259 = arith.divf %257, %258 : vector<8x128xf32>
    %260 = arith.mulf %251, %230 : vector<8x128xf32>
    %261 = arith.mulf %245, %253 : vector<8x128xf32>
    %262 = arith.addf %260, %261 : vector<8x128xf32>
    %263 = math.tanh %262 : vector<8x128xf32>
    %264 = arith.mulf %259, %263 : vector<8x128xf32>
    %c8_i32_72 = arith.constant 8 : i32
    %c0_73 = arith.constant 0 : index
    %c0_74 = arith.constant 0 : index
    %265 = vector.load %arg4[%c0_73, %c0_74] : memref<128x128xf32, #tpu.memory_space<vmem>>, vector<128x128xf32>
    %cst_75 = arith.constant dense<0.000000e+00> : vector<8x128xf32>
    %266 = tpu.matmul %264, %265, %cst_75 {dimension_numbers = #tpu.dot_dimension_numbers<[1], [0], [0], [1], [0, 0, 1, 1], [], []>} : vector<8x128xf32>, vector<128x128xf32>, vector<8x128xf32> -> vector<8x128xf32>
    %c0_76 = arith.constant 0 : index
    %c0_77 = arith.constant 0 : index
    %267 = vector.load %arg5[%c0_76, %c0_77] : memref<1x128xf32, #tpu.memory_space<vmem>>, vector<1x128xf32>
    %268 = vector.broadcast %267 : vector<1x128xf32> to vector<8x128xf32>
    %269 = arith.addf %266, %268 : vector<8x128xf32>
    %c0_78 = arith.constant 0 : index
    %c0_79 = arith.constant 0 : index
    %270 = vector.load %arg6[%c0_78, %c0_79] : memref<8x128xf32, #tpu.memory_space<vmem>>, vector<8x128xf32>
    tpu.vector_store %arg6[%c0_78, %c0_79], %269 {strides = array<i32>} : memref<8x128xf32, #tpu.memory_space<vmem>>, vector<8x128xf32>,
    return
  }
}

</mosaic_0001>

<bundles_post_ra>
// kernel: tpu_custom_call.1
= control target key start
LH: loop header
LB: loop body
LE: loop exit
PB: predicated region body
PF: predicated region fallthrough
CT: control target
= control target key end

     0   :  { %11 = vsyncpa [#allocation4], 0  ;;  %s3431_s0 = inlined_call_operand.vmem [shape: f32[64,8], index: 0, kind: input, shape index: {}]   ;;  %s3432_s1 = inlined_call_operand.vmem [shape: f32[8,512], index: 1, kind: input, shape index: {}]   ;;  %s3433_s2 = inlined_call_operand.hbm [shape: f32[128,512], index: 2, kind: input, shape index: {}]   ;;  %s3434_s3 = inlined_call_operand.vmem [shape: f32[1,512], index: 3, kind: input, shape index: {}]   ;;  %s3435_s4 = inlined_call_operand.hbm [shape: f32[128,128], index: 4, kind: input, shape index: {}]   ;;  %s3436_s5 = inlined_call_operand.vmem [shape: f32[1,128], index: 5, kind: input, shape index: {}]   ;;  %s3437_s6 = inlined_call_operand.hbm [shape: f32[8,128], index: 6, kind: output, shape index: {}]  }
   0x1   :  { %12 = vsyncpa [#allocation7], 0 }
   0x2   :  { %13 = vsyncpa [#allocation5], 0  ;;  %s2869_s21 = smov [#allocation3]   ;;  %s2797_s25 = scalar_lea.hbm %s3433_s2, 8192 }
   0x3   :  { %s23_s22 = sshll.u32 %s2869_s21, 4  ;;  %p2798_p0 = scmp.ne.s32.totalorder %s3433_s2, %s2797_s25  ;;  %s24_s22 = int_to_ptr.vmem [resolvable:$true] %s23_s22 }
   0x4   :  { %p2801_p1 = scmp.lt.u32.totalorder %s2797_s25, %s3433_s2 }
   0x6   :  { %p2803_p2 = pnand %p2801_p1, %p2798_p0 }
   0x8   :  { %2806 = shalt.err (!%p2803_p2)
}
   0x9   :  { %s2807_s30 = scalar_lea.vmem %s24_s22, 8192  ;;  %p2812_p4 = scmp.lt.s32.totalorder %s24_s22, %s24_s22 }
   0xa   :  { %p2808_p3 = scmp.ne.s32.totalorder %s24_s22, %s2807_s30  ;;  %p2813_p5 = scmp.lt.s32.totalorder %s2807_s30, %s2807_s30 }
   0xc   :  { %p2814_p6 = por %p2813_p5, %p2812_p4 }
   0xe   :  { %p2815_p7 = pnand %p2814_p6, %p2808_p3 }
  0x10   :  { %2818 = shalt.err (!%p2815_p7)
}
  0x11   :  { %s2870_s7 = smov 512   ;;  %s2871_s8 = smov 32  }
  0x12   :  { %29 = dma.hbm_to_vmem [thread:$0]  %s3433_s2, 8192, %s24_s22, [#allocation4], %s2870_s7, %s2870_s7, %s2871_s8  }
  0x13   :  { %s2872_s11 = smov [#allocation6]   ;;  %s2819_s15 = scalar_lea.hbm %s3435_s4, 2048 }
  0x14   :  { %s37_s12 = sshll.u32 %s2872_s11, 4  ;;  %p2820_p8 = scmp.ne.s32.totalorder %s3435_s4, %s2819_s15  ;;  %s38_s12 = int_to_ptr.vmem [resolvable:$true] %s37_s12 }
  0x15   :  { %p2823_p9 = scmp.lt.u32.totalorder %s2819_s15, %s3435_s4 }
  0x17   :  { %p2825_p10 = pnand %p2823_p9, %p2820_p8 }
  0x19   :  { %2828 = shalt.err (!%p2825_p10)
}
  0x1a   :  { %s2829_s20 = scalar_lea.vmem %s38_s12, 2048  ;;  %p2834_p12 = scmp.lt.s32.totalorder %s38_s12, %s38_s12 }
  0x1b   :  { %p2830_p11 = scmp.ne.s32.totalorder %s38_s12, %s2829_s20  ;;  %p2835_p13 = scmp.lt.s32.totalorder %s2829_s20, %s2829_s20 }
  0x1d   :  { %p2836_p0 = por %p2835_p13, %p2834_p12 }
  0x1f   :  { %p2837_p1 = pnand %p2836_p0, %p2830_p11 }
  0x21   :  { %2840 = shalt.err (!%p2837_p1)
}
  0x22   :  { %s2873_s2 = smov 128   ;;  %s2874_s21 = smov 8  }
  0x23   :  { %43 = dma.hbm_to_vmem [thread:$0]  %s3435_s4, 2048, %s38_s12, [#allocation7], %s2873_s2, %s2873_s2, %s2874_s21  }
  0x24   :  { %2863 = dma.done.wait [#allocation4], 8192  }
  0x25   :  { %2864 = vsyncadd [#allocation4], 4294959104 }
  0x26   :  { %2865 = dma.done.wait [#allocation7], 2048  }
  0x27   :  { %2866 = vsyncadd [#allocation7], 4294965248  ;;  %v2875_v0 = vmov 0.0   ;;  %v61_v1 = vld [vmem:[%s3432_s1 + $0x8] sm:$0xff]  ;;  %v63_v2 = vld [vmem:[%s3432_s1 + $0x18] sm:$0xff]  ;;  %vm86_vm0 = vcmask 64512  }
  0x28   :  { %175 = vmatprep.mubr.f32.mxu0 %v2875_v0  ;;  %288 = vmatprep.mubr.f32.mxu1 %v2875_v0  ;;  %v60_v3 = vld [vmem:[%s3432_s1] sm:$0xff]  ;;  %v62_v4 = vld [vmem:[%s3432_s1 + $0x10] sm:$0xff]  ;;  %v370_v6 = vld [vmem:[#allocation3 + $0x8] sm:$0xff]  ;;  %vm2877_vm1 = vmmov 0   ;;  %s2878_s23 = smov [#allocation8]  }
  0x29   :  { %111 = vmatprep.subr.mxu0 %v61_v1  ;;  %224 = vmatprep.subr.mxu1 %v63_v2  ;;  %v52_v5 = vld [vmem:[%s3431_s0] sm:$0xff]  ;;  %v374_v7 = vld [vmem:[#allocation3 + $0x28] sm:$0xff]  ;;  %v372_v8 = vld [vmem:[#allocation3 + $0x18] sm:$0xff]  ;;  %s1949_s24 = sshll.u32 %s2878_s23, 4  ;;  %s1950_s24 = int_to_ptr.vmem [resolvable:$true] %s1949_s24 }
  0x2a   :  { %112 = vmatpush1.msra.mxu0 %v60_v3  ;;  %225 = vmatpush1.msra.mxu1 %v62_v4  ;;  %v376_v9 = vld [vmem:[#allocation3 + $0x38] sm:$0xff]  ;;  %v2957_v10 = vpack.c.bf16 %v374_v7, %v370_v6  ;;  %v369_v12 = vld [vmem:[#allocation3] sm:$0xff]  ;;  %v371_v14 = vld [vmem:[#allocation3 + $0x10] sm:$0xff]  ;;  %s2841_s25 = scalar_lea.vmem %s1950_s24, 128  ;;  %p2846_p3 = scmp.lt.s32.totalorder %s1950_s24, %s1950_s24 }
  0x2b   :  { %1966 = vmatmul.mubr.msk.f32.vlgmr.msra.gmra.mrb[0].mxu0 %vm86_vm0, %v52_v5  ;;  %1974 = vmatmul.mubr.msk.f32.vlgmr.msra.gmra.mrb[0].mxu1 %vm86_vm0, %v52_v5  ;;  %v2959_v11 = vpack.c.bf16 %v376_v9, %v372_v8  ;;  %v373_v13 = vld [vmem:[#allocation3 + $0x20] sm:$0xff]  ;;  %v375_v16 = vld [vmem:[#allocation3 + $0x30] sm:$0xff]  ;;  %v53_v17 = vld [vmem:[%s3431_s0 + $0x8] sm:$0xff]  ;;  %p2842_p2 = scmp.ne.s32.totalorder %s1950_s24, %s2841_s25  ;;  %p2847_p4 = scmp.lt.s32.totalorder %s2841_s25, %s2841_s25 }
  0x2c   :  { %v2961_v15 = vpack.c.bf16 %v373_v13, %v369_v12  ;;  %181 = vmatprep.mubr.f32.mxu0 %v2875_v0  ;;  %294 = vmatprep.mubr.f32.mxu1 %v2875_v0  ;;  %v378_v18 = vld [vmem:[#allocation3 + $0x48] sm:$0xff]  ;;  %v2970_v19 = vpack.c.bf16 %v375_v16, %v371_v14  ;;  %v380_v21 = vld [vmem:[#allocation3 + $0x58] sm:$0xff]  ;;  %v377_v25 = vld [vmem:[#allocation3 + $0x40] sm:$0xff] }
  0x2d   :  { %2060 = vmatprep.subr.bf16.mxu0 %v2957_v10  ;;  %2092 = vmatprep.subr.bf16.mxu1 %v2959_v11  ;;  %v382_v20 = vld [vmem:[#allocation3 + $0x68] sm:$0xff]  ;;  %v384_v22 = vld [vmem:[#allocation3 + $0x78] sm:$0xff]  ;;  %v381_v26 = vld [vmem:[#allocation3 + $0x60] sm:$0xff]  ;;  %p2848_p5 = por %p2847_p4, %p2846_p3 }
  0x2e   :  { %2062 = vmatpush1.bf16.msra.mxu0 %v2961_v15  ;;  %v2973_v23 = vpack.c.bf16 %v382_v20, %v378_v18  ;;  %v2975_v24 = vpack.c.bf16 %v384_v22, %v380_v21  ;;  %v379_v27 = vld [vmem:[#allocation3 + $0x50] sm:$0xff]  ;;  %2094 = vmatpush1.bf16.msra.mxu1 %v2970_v19  ;;  %v2979_v28 = vpack.c.bf16 %v381_v26, %v377_v25  ;;  %v386_v31 = vld [vmem:[#allocation3 + $0x88] sm:$0xff]  ;;  %v388_v34 = vld [vmem:[#allocation3 + $0x98] sm:$0xff] }
  0x2f   :  { %1967 = vmatmul.mubr.msk.f32.gmra.mrb[2].mxu0 %vm86_vm0, %v53_v17  ;;  %v383_v29 = vld [vmem:[#allocation3 + $0x70] sm:$0xff]  ;;  %1975 = vmatmul.mubr.msk.f32.gmra.mrb[2].mxu1 %vm86_vm0, %v53_v17  ;;  %v390_v33 = vld [vmem:[#allocation3 + $0xa8] sm:$0xff]  ;;  %v392_v35 = vld [vmem:[#allocation3 + $0xb8] sm:$0xff]  ;;  %p2849_p6 = pnand %p2848_p5, %p2842_p2 }
  0x30   :  { %v54_v30 = vld [vmem:[%s3431_s0 + $0x10] sm:$0xff]  ;;  %2064 = vmatprep.subr.bf16.mxu0 %v2973_v23  ;;  %v2986_v32 = vpack.c.bf16 %v383_v29, %v379_v27  ;;  %2096 = vmatprep.subr.bf16.mxu1 %v2975_v24  ;;  %v2990_v36 = vpack.c.bf16 %v390_v33, %v386_v31  ;;  %v2992_v37 = vpack.c.bf16 %v392_v35, %v388_v34  ;;  %v385_v38 = vld [vmem:[#allocation3 + $0x80] sm:$0xff]  ;;  %v55_v43 = vld [vmem:[%s3431_s0 + $0x18] sm:$0xff] }
  0x31   :  { %187 = vmatprep.mubr.f32.mxu0 %v2875_v0  ;;  %v389_v39 = vld [vmem:[#allocation3 + $0xa0] sm:$0xff]  ;;  %v387_v40 = vld [vmem:[#allocation3 + $0x90] sm:$0xff]  ;;  %300 = vmatprep.mubr.f32.mxu1 %v2875_v0  ;;  %v394_v44 = vld [vmem:[#allocation3 + $0xc8] sm:$0xff] }
  0x32   :  { %2066 = vmatpush1.bf16.msra.mxu0 %v2979_v28  ;;  %v2996_v41 = vpack.c.bf16 %v389_v39, %v385_v38  ;;  %v391_v42 = vld [vmem:[#allocation3 + $0xb0] sm:$0xff]  ;;  %2098 = vmatpush1.bf16.msra.mxu1 %v2986_v32  ;;  %v398_v46 = vld [vmem:[#allocation3 + $0xe8] sm:$0xff]  ;;  %v396_v47 = vld [vmem:[#allocation3 + $0xd8] sm:$0xff] }
  0x33   :  { %1968 = vmatmul.mubr.msk.f32.gmra.mrb[4].mxu0 %vm86_vm0, %v54_v30  ;;  %v3003_v45 = vpack.c.bf16 %v391_v42, %v387_v40  ;;  %v400_v48 = vld [vmem:[#allocation3 + $0xf8] sm:$0xff]  ;;  %1976 = vmatmul.mubr.msk.f32.gmra.mrb[4].mxu1 %vm86_vm0, %v54_v30  ;;  %v3007_v49 = vpack.c.bf16 %v398_v46, %v394_v44  ;;  %v393_v50 = vld [vmem:[#allocation3 + $0xc0] sm:$0xff]  ;;  %v395_v52 = vld [vmem:[#allocation3 + $0xd0] sm:$0xff] }
  0x34   :  { %2068 = vmatprep.subr.bf16.mxu0 %v2990_v36  ;;  %v397_v51 = vld [vmem:[#allocation3 + $0xe0] sm:$0xff]  ;;  %2100 = vmatprep.subr.bf16.mxu1 %v2992_v37  ;;  %v3011_v53 = vpack.c.bf16 %v400_v48, %v396_v47  ;;  %v399_v54 = vld [vmem:[#allocation3 + $0xf0] sm:$0xff]  ;;  %v402_v55 = vld [vmem:[#allocation3 + $0x108] sm:$0xff] }
  0x35   :  { %193 = vmatprep.mubr.f32.mxu0 %v2875_v0  ;;  %306 = vmatprep.mubr.f32.mxu1 %v2875_v0  ;;  %v3015_v56 = vpack.c.bf16 %v397_v51, %v393_v50  ;;  %v406_v57 = vld [vmem:[#allocation3 + $0x128] sm:$0xff]  ;;  %v404_v58 = vld [vmem:[#allocation3 + $0x118] sm:$0xff]  ;;  %v3019_v60 = vpack.c.bf16 %v399_v54, %v395_v52  ;;  %v401_v61 = vld [vmem:[#allocation3 + $0x100] sm:$0xff] }
  0x36   :  { %2070 = vmatpush1.bf16.msra.mxu0 %v2996_v41  ;;  %v408_v59 = vld [vmem:[#allocation3 + $0x138] sm:$0xff]  ;;  %2102 = vmatpush1.bf16.msra.mxu1 %v3003_v45  ;;  %v405_v62 = vld [vmem:[#allocation3 + $0x120] sm:$0xff]  ;;  %v3026_v1 = vpack.c.bf16 %v406_v57, %v402_v55  ;;  %v403_v2 = vld [vmem:[#allocation3 + $0x110] sm:$0xff] }
  0x37   :  { %1969 = vmatmul.mubr.msk.f32.gmra.mrb[6].mxu0 %vm86_vm0, %v55_v43  ;;  %1977 = vmatmul.mubr.msk.f32.gmra.mrb[6].mxu1 %vm86_vm0, %v55_v43  ;;  %v56_v63 = vld [vmem:[%s3431_s0 + $0x20] sm:$0xff]  ;;  %v407_v3 = vld [vmem:[#allocation3 + $0x130] sm:$0xff]  ;;  %v3030_v4 = vpack.c.bf16 %v408_v59, %v404_v58  ;;  %v410_v5 = vld [vmem:[#allocation3 + $0x148] sm:$0xff]  ;;  %v3034_v7 = vpack.c.bf16 %v405_v62, %v401_v61  ;;  %v66_v62 = vlaneseq }
  0x38   :  { %2072 = vmatprep.subr.bf16.mxu0 %v3007_v49  ;;  %2104 = vmatprep.subr.bf16.mxu1 %v3011_v53  ;;  %v414_v6 = vld [vmem:[#allocation3 + $0x168] sm:$0xff]  ;;  %v412_v8 = vld [vmem:[#allocation3 + $0x158] sm:$0xff]  ;;  %v3038_v12 = vpack.c.bf16 %v407_v3, %v403_v2  ;;  %v409_v13 = vld [vmem:[#allocation3 + $0x140] sm:$0xff] }
  0x39   :  { %199 = vmatprep.mubr.f32.mxu0 %v2875_v0  ;;  %312 = vmatprep.mubr.f32.mxu1 %v2875_v0  ;;  %v416_v9 = vld [vmem:[#allocation3 + $0x178] sm:$0xff]  ;;  %v413_v14 = vld [vmem:[#allocation3 + $0x160] sm:$0xff]  ;;  %v57_v16 = vld [vmem:[%s3431_s0 + $0x28] sm:$0xff]  ;;  %v3045_v17 = vpack.c.bf16 %v414_v6, %v410_v5 }
  0x3a   :  { %2074 = vmatpush1.bf16.msra.mxu0 %v3015_v56  ;;  %2106 = vmatpush1.bf16.msra.mxu1 %v3019_v60  ;;  %v411_v18 = vld [vmem:[#allocation3 + $0x150] sm:$0xff]  ;;  %v3049_v21 = vpack.c.bf16 %v416_v9, %v412_v8  ;;  %v418_v22 = vld [vmem:[#allocation3 + $0x188] sm:$0xff]  ;;  %v3053_v26 = vpack.c.bf16 %v413_v14, %v409_v13  ;;  %v420_v27 = vld [vmem:[#allocation3 + $0x198] sm:$0xff] }
  0x3b   :  { %1970 = vmatmul.mubr.msk.f32.gmra.mrb[8].mxu0 %vm86_vm0, %v56_v63  ;;  %1978 = vmatmul.mubr.msk.f32.gmra.mrb[8].mxu1 %vm86_vm0, %v56_v63  ;;  %v415_v20 = vld [vmem:[#allocation3 + $0x170] sm:$0xff]  ;;  %v422_v25 = vld [vmem:[#allocation3 + $0x1a8] sm:$0xff]  ;;  %v424_v29 = vld [vmem:[#allocation3 + $0x1b8] sm:$0xff]  ;;  %v67_v63 = vshrl.u32 %v66_v62, 7 }
  0x3c   :  { %2076 = vmatprep.subr.bf16.mxu0 %v3026_v1  ;;  %2108 = vmatprep.subr.bf16.mxu1 %v3030_v4  ;;  %v3057_v30 = vpack.c.bf16 %v415_v20, %v411_v18  ;;  %v417_v31 = vld [vmem:[#allocation3 + $0x180] sm:$0xff]  ;;  %v58_v34 = vld [vmem:[%s3431_s0 + $0x30] sm:$0xff]  ;;  %v3064_v35 = vpack.c.bf16 %v422_v25, %v418_v22  ;;  %v3068_v40 = vpack.c.bf16 %v424_v29, %v420_v27  ;;  %v426_v42 = vld [vmem:[#allocation3 + $0x1c8] sm:$0xff] }
  0x3d   :  { %205 = vmatprep.mubr.f32.mxu0 %v2875_v0  ;;  %318 = vmatprep.mubr.f32.mxu1 %v2875_v0  ;;  %v421_v33 = vld [vmem:[#allocation3 + $0x1a0] sm:$0xff]  ;;  %v419_v38 = vld [vmem:[#allocation3 + $0x190] sm:$0xff]  ;;  %v430_v43 = vld [vmem:[#allocation3 + $0x1e8] sm:$0xff]  ;;  %v68_v2 = vsub.s32 0, %v67_v63  ;;  %v72_v5 = vsub.s32 1, %v67_v63  ;;  %v80_v13 = vsub.s32 3, %v67_v63 }
  0x3e   :  { %2078 = vmatpush1.bf16.msra.mxu0 %v3034_v7  ;;  %2110 = vmatpush1.bf16.msra.mxu1 %v3038_v12  ;;  %v423_v39 = vld [vmem:[#allocation3 + $0x1b0] sm:$0xff]  ;;  %v3072_v44 = vpack.c.bf16 %v421_v33, %v417_v31  ;;  %v428_v46 = vld [vmem:[#allocation3 + $0x1d8] sm:$0xff]  ;;  %v425_v50 = vld [vmem:[#allocation3 + $0x1c0] sm:$0xff]  ;;  %v3083_v54 = vpack.c.bf16 %v430_v43, %v426_v42  ;;  %v76_v31 = vsub.s32 2, %v67_v63 }
  0x3f   :  { %1971 = vmatmul.mubr.msk.f32.gmra.mrb[10].mxu0 %vm86_vm0, %v57_v16  ;;  %1979 = vmatmul.mubr.msk.f32.gmra.mrb[10].mxu1 %vm86_vm0, %v57_v16  ;;  %v432_v47 = vld [vmem:[#allocation3 + $0x1f8] sm:$0xff]  ;;  %v3076_v48 = vpack.c.bf16 %v423_v39, %v419_v38  ;;  %v429_v51 = vld [vmem:[#allocation3 + $0x1e0] sm:$0xff]  ;;  %v427_v55 = vld [vmem:[#allocation3 + $0x1d0] sm:$0xff] }
  0x40   :  { %2080 = vmatprep.subr.bf16.mxu0 %v3045_v17  ;;  %2112 = vmatprep.subr.bf16.mxu1 %v3049_v21  ;;  %v59_v52 = vld [vmem:[%s3431_s0 + $0x38] sm:$0xff]  ;;  %v431_v57 = vld [vmem:[#allocation3 + $0x1f0] sm:$0xff]  ;;  %v3087_v58 = vpack.c.bf16 %v432_v47, %v428_v46  ;;  %v3091_v59 = vpack.c.bf16 %v429_v51, %v425_v50  ;;  %v64_v3 = vld [vmem:[%s3434_s3] sm:$0xf] }
  0x41   :  { %211 = vmatprep.mubr.f32.mxu0 %v2875_v0  ;;  %324 = vmatprep.mubr.f32.mxu1 %v2875_v0  ;;  %v3095_v61 = vpack.c.bf16 %v431_v57, %v427_v55  ;;  %v3145_v6 = vrot.slane %v64_v3, %v68_v2  ;;  %v3147_v8 = vrot.slane %v64_v3, %v72_v5 }
  0x42   :  { %2082 = vmatpush1.bf16.msra.mxu0 %v3053_v26  ;;  %2114 = vmatpush1.bf16.msra.mxu1 %v3057_v30  ;;  %v3151_v29 = vrot.slane %v64_v3, %v80_v13 }
  0x43   :  { %1972 = vmatmul.mubr.msk.f32.gmra.mrb[12].mxu0 %vm86_vm0, %v58_v34  ;;  %1980 = vmatmul.mubr.msk.f32.gmra.mrb[12].mxu1 %vm86_vm0, %v58_v34  ;;  %v3154_v34 = vrot.slane %v64_v3, %v76_v31 }
  0x44   :  { %2084 = vmatprep.subr.bf16.mxu0 %v3064_v35  ;;  %2116 = vmatprep.subr.bf16.mxu1 %v3068_v40 }
  0x45   :  { %217 = vmatprep.mubr.f32.mxu0 %v2875_v0  ;;  %330 = vmatprep.mubr.f32.mxu1 %v2875_v0 }
  0x46   :  { %2086 = vmatpush1.bf16.msra.mxu0 %v3072_v44  ;;  %2118 = vmatpush1.bf16.msra.mxu1 %v3076_v48 }
  0x47   :  { %1973 = vmatmul.mubr.msk.f32.gmra.mrb[14].mxu0 %vm86_vm0, %v59_v52  ;;  %1981 = vmatmul.mubr.msk.f32.gmra.mrb[14].mxu1 %vm86_vm0, %v59_v52 }
  0x48   :  { %2088 = vmatprep.subr.bf16.mxu0 %v3083_v54  ;;  %2120 = vmatprep.subr.bf16.mxu1 %v3087_v58 }
  0x49   :  { %504 = vmatprep.mubr.f32.mxu0 %v2875_v0  ;;  %575 = vmatprep.mubr.f32.mxu1 %v2875_v0 }
  0x4a   :  { %2090 = vmatpush1.bf16.msra.mxu0 %v3091_v59  ;;  %2122 = vmatpush1.bf16.msra.mxu1 %v3095_v61 }
  0x4b   :  { %2124 = vmatprep.subr.bf16.mxu0 %v2957_v10  ;;  %2156 = vmatprep.subr.bf16.mxu1 %v2959_v11 }
  0x4d   :  { %505 = vmatmul.mubr.f32.vlgmr.msra.gmra.mrb[0].mxu0 %v2875_v0  ;;  %576 = vmatmul.mubr.f32.vlgmr.msra.gmra.mrb[0].mxu1 %v2875_v0 }
  0x4e   :  { %2126 = vmatpush1.bf16.msra.mxu0 %v2961_v15  ;;  %2158 = vmatpush1.bf16.msra.mxu1 %v2970_v19 }
  0x4f   :  { %2128 = vmatprep.subr.bf16.mxu0 %v2973_v23  ;;  %2160 = vmatprep.subr.bf16.mxu1 %v2975_v24 }
  0x50   :  { %681 = vmatprep.mubr.f32.mxu0 %v2875_v0  ;;  %752 = vmatprep.mubr.f32.mxu1 %v2875_v0 }
  0x52   :  { %2130 = vmatpush1.bf16.msra.mxu0 %v2979_v28  ;;  %2162 = vmatpush1.bf16.msra.mxu1 %v2986_v32 }
  0x53   :  { %2132 = vmatprep.subr.bf16.mxu0 %v2990_v36  ;;  %2164 = vmatprep.subr.bf16.mxu1 %v2992_v37 }
  0x56   :  { %2134 = vmatpush1.bf16.msra.mxu0 %v2996_v41  ;;  %2166 = vmatpush1.bf16.msra.mxu1 %v3003_v45 }
  0x57   :  { %2136 = vmatprep.subr.bf16.mxu0 %v3007_v49  ;;  %2168 = vmatprep.subr.bf16.mxu1 %v3011_v53 }
  0x5a   :  { %2138 = vmatpush1.bf16.msra.mxu0 %v3015_v56  ;;  %2170 = vmatpush1.bf16.msra.mxu1 %v3019_v60 }
  0x5b   :  { %2140 = vmatprep.subr.bf16.mxu0 %v3026_v1  ;;  %2172 = vmatprep.subr.bf16.mxu1 %v3030_v4 }
  0x5e   :  { %2142 = vmatpush1.bf16.msra.mxu0 %v3034_v7  ;;  %2174 = vmatpush1.bf16.msra.mxu1 %v3038_v12 }
  0x5f   :  { %2144 = vmatprep.subr.bf16.mxu0 %v3045_v17  ;;  %2176 = vmatprep.subr.bf16.mxu1 %v3049_v21 }
  0x62   :  { %2146 = vmatpush1.bf16.msra.mxu0 %v3053_v26  ;;  %2178 = vmatpush1.bf16.msra.mxu1 %v3057_v30 }
  0x63   :  { %2148 = vmatprep.subr.bf16.mxu0 %v3064_v35  ;;  %2180 = vmatprep.subr.bf16.mxu1 %v3068_v40 }
  0x66   :  { %2150 = vmatpush1.bf16.msra.mxu0 %v3072_v44  ;;  %2182 = vmatpush1.bf16.msra.mxu1 %v3076_v48 }
  0x67   :  { %2152 = vmatprep.subr.bf16.mxu0 %v3083_v54  ;;  %2184 = vmatprep.subr.bf16.mxu1 %v3087_v58 }
  0x6a   :  { %2154 = vmatpush1.bf16.msra.mxu0 %v3091_v59  ;;  %2186 = vmatpush1.bf16.msra.mxu1 %v3095_v61 }
  0x6b   :  { %2188 = vmatprep.subr.bf16.mxu0 %v2957_v10  ;;  %2220 = vmatprep.subr.bf16.mxu1 %v2959_v11 }
 0x120   :  { %v506_v9 = vpop.f32.mrb[0].mxu0  ;;  %v577_v16 = vpop.f32.mrb[0].mxu1 }
 0x121   :  { %v2595_v14 = vadd.f32 %v506_v9, %v3145_v6  ;;  %v508_v18 = vpop.f32.mrb[1].mxu0  ;;  %v579_v22 = vpop.f32.mrb[1].mxu1  ;;  %v2611_v39 = vadd.f32 %v577_v16, %v3154_v34 }
 0x122   :  { %v2596_v20 = vadd.f32 %v508_v18, %v3147_v8  ;;  %v2612_v33 = vadd.f32 %v579_v22, %v3151_v29 }
 0x123   :  { %v1982_v25 = vmul.f32 -1.442695, %v2595_v14 }
 0x124   :  { %v1983_v27 = vmul.f32 -1.442695, %v2596_v20  ;;  %v1984_v38 = vmul.f32 -1.442695, %v2612_v33 }
 0x125   :  { %2669 = vpow2.f32 %v1982_v25 }
 0x126   :  { %2671 = vpow2.f32 %v1983_v27 }
 0x127   :  { %2673 = vpow2.f32 %v1984_v38 }
 0x128   :  { %2675 = vtanh.f32 %v2611_v39 }
 0x12f   :  { %v2670_v42 = vpop.eup %2669 }
 0x130   :  { %v2672_v43 = vpop.eup %2671  ;;  %v589_v46 = vadd.f32 1.0, %v2670_v42 }
 0x131   :  { %v595_v47 = vadd.f32 1.0, %v2672_v43  ;;  %v2674_v50 = vpop.eup %2673 }
 0x132   :  { %2677 = vrcp.f32 %v589_v46  ;;  %v2676_v51 = vpop.eup %2675  ;;  %v602_v62 = vadd.f32 1.0, %v2674_v50 }
 0x133   :  { %2679 = vrcp.f32 %v595_v47 }
 0x134   :  { %2681 = vrcp.f32 %v602_v62 }
 0x13c   :  { %v2678_v52 = vpop.eup %2677 }
 0x13d   :  { %v2680_v55 = vpop.eup %2679  ;;  %v606_v57 = vmul.f32 %v2678_v52, %v2676_v51 }
 0x13e   :  { %v605_v63 = vmul.f32 0.0, %v2680_v55  ;;  %v2682_v3 = vpop.eup %2681 }
 0x140   :  { %v3157_v2 = vadd.f32 %v606_v57, %v605_v63 }
 0x142   :  { %2683 = vtanh.f32 %v3157_v2 }
 0x14c   :  { %v2684_v5 = vpop.eup %2683 }
 0x14d   :  { %v609_v9 = vmul.f32 %v2684_v5, %v2682_v3 }
 0x14f   :  { %682 = vmatmul.mubr.f32.vlgmr.msra.gmra.mrb[2].mxu0 %v609_v9  ;;  %753 = vmatmul.mubr.f32.vlgmr.msra.gmra.mrb[2].mxu1 %v609_v9 }
 0x150   :  { %2190 = vmatpush1.bf16.msra.mxu0 %v2961_v15  ;;  %2222 = vmatpush1.bf16.msra.mxu1 %v2970_v19 }
 0x151   :  { %2192 = vmatprep.subr.bf16.mxu0 %v2973_v23  ;;  %2224 = vmatprep.subr.bf16.mxu1 %v2975_v24 }
 0x152   :  { %858 = vmatprep.mubr.f32.mxu0 %v2875_v0  ;;  %929 = vmatprep.mubr.f32.mxu1 %v2875_v0 }
 0x154   :  { %2194 = vmatpush1.bf16.msra.mxu0 %v2979_v28  ;;  %2226 = vmatpush1.bf16.msra.mxu1 %v2986_v32 }
 0x155   :  { %2196 = vmatprep.subr.bf16.mxu0 %v2990_v36  ;;  %2228 = vmatprep.subr.bf16.mxu1 %v2992_v37 }
 0x158   :  { %2198 = vmatpush1.bf16.msra.mxu0 %v2996_v41  ;;  %2230 = vmatpush1.bf16.msra.mxu1 %v3003_v45 }
 0x159   :  { %2200 = vmatprep.subr.bf16.mxu0 %v3007_v49  ;;  %2232 = vmatprep.subr.bf16.mxu1 %v3011_v53 }
 0x15c   :  { %2202 = vmatpush1.bf16.msra.mxu0 %v3015_v56  ;;  %2234 = vmatpush1.bf16.msra.mxu1 %v3019_v60 }
 0x15d   :  { %2204 = vmatprep.subr.bf16.mxu0 %v3026_v1  ;;  %2236 = vmatprep.subr.bf16.mxu1 %v3030_v4 }
 0x160   :  { %2206 = vmatpush1.bf16.msra.mxu0 %v3034_v7  ;;  %2238 = vmatpush1.bf16.msra.mxu1 %v3038_v12 }
 0x161   :  { %2208 = vmatprep.subr.bf16.mxu0 %v3045_v17  ;;  %2240 = vmatprep.subr.bf16.mxu1 %v3049_v21 }
 0x164   :  { %2210 = vmatpush1.bf16.msra.mxu0 %v3053_v26  ;;  %2242 = vmatpush1.bf16.msra.mxu1 %v3057_v30 }
 0x165   :  { %2212 = vmatprep.subr.bf16.mxu0 %v3064_v35  ;;  %2244 = vmatprep.subr.bf16.mxu1 %v3068_v40 }
 0x168   :  { %2214 = vmatpush1.bf16.msra.mxu0 %v3072_v44  ;;  %2246 = vmatpush1.bf16.msra.mxu1 %v3076_v48 }
 0x169   :  { %2216 = vmatprep.subr.bf16.mxu0 %v3083_v54  ;;  %2248 = vmatprep.subr.bf16.mxu1 %v3087_v58 }
 0x16c   :  { %2218 = vmatpush1.bf16.msra.mxu0 %v3091_v59  ;;  %2250 = vmatpush1.bf16.msra.mxu1 %v3095_v61 }
 0x16d   :  { %2252 = vmatprep.subr.bf16.mxu0 %v2957_v10  ;;  %2284 = vmatprep.subr.bf16.mxu1 %v2959_v11 }
 0x222   :  { %v683_v13 = vpop.f32.mrb[2].mxu0  ;;  %v754_v14 = vpop.f32.mrb[2].mxu1 }
 0x223   :  { %v2597_v16 = vadd.f32 %v683_v13, %v3145_v6  ;;  %v685_v18 = vpop.f32.mrb[3].mxu0  ;;  %v756_v20 = vpop.f32.mrb[3].mxu1  ;;  %v2613_v38 = vadd.f32 %v754_v14, %v3154_v34 }
 0x224   :  { %v2598_v22 = vadd.f32 %v685_v18, %v3147_v8  ;;  %v2614_v31 = vadd.f32 %v756_v20, %v3151_v29 }
 0x225   :  { %v1985_v25 = vmul.f32 -1.442695, %v2597_v16 }
 0x226   :  { %v1986_v27 = vmul.f32 -1.442695, %v2598_v22  ;;  %v1987_v33 = vmul.f32 -1.442695, %v2614_v31 }
 0x227   :  { %2685 = vpow2.f32 %v1985_v25 }
 0x228   :  { %2687 = vpow2.f32 %v1986_v27 }
 0x229   :  { %2689 = vpow2.f32 %v1987_v33 }
 0x22a   :  { %2691 = vtanh.f32 %v2613_v38 }
 0x231   :  { %v2686_v39 = vpop.eup %2685 }
 0x232   :  { %v2688_v42 = vpop.eup %2687  ;;  %v766_v43 = vadd.f32 1.0, %v2686_v39 }
 0x233   :  { %v772_v46 = vadd.f32 1.0, %v2688_v42  ;;  %v2690_v47 = vpop.eup %2689 }
 0x234   :  { %2693 = vrcp.f32 %v766_v43  ;;  %v2692_v50 = vpop.eup %2691  ;;  %v779_v57 = vadd.f32 1.0, %v2690_v47 }
 0x235   :  { %2695 = vrcp.f32 %v772_v46 }
 0x236   :  { %2697 = vrcp.f32 %v779_v57 }
 0x23e   :  { %v2694_v51 = vpop.eup %2693 }
 0x23f   :  { %v2696_v52 = vpop.eup %2695  ;;  %v783_v55 = vmul.f32 %v2694_v51, %v2692_v50 }
 0x240   :  { %v782_v62 = vmul.f32 %v2696_v52, %v3157_v2  ;;  %v2698_v3 = vpop.eup %2697 }
 0x242   :  { %v3199_v63 = vadd.f32 %v783_v55, %v782_v62 }
 0x244   :  { %2699 = vtanh.f32 %v3199_v63 }
 0x24e   :  { %v2700_v5 = vpop.eup %2699 }
 0x24f   :  { %v786_v9 = vmul.f32 %v2700_v5, %v2698_v3 }
 0x251   :  { %859 = vmatmul.mubr.f32.vlgmr.msra.gmra.mrb[4].mxu0 %v786_v9  ;;  %930 = vmatmul.mubr.f32.vlgmr.msra.gmra.mrb[4].mxu1 %v786_v9 }
 0x252   :  { %2254 = vmatpush1.bf16.msra.mxu0 %v2961_v15  ;;  %2286 = vmatpush1.bf16.msra.mxu1 %v2970_v19 }
 0x253   :  { %2256 = vmatprep.subr.bf16.mxu0 %v2973_v23  ;;  %2288 = vmatprep.subr.bf16.mxu1 %v2975_v24 }
 0x254   :  { %1035 = vmatprep.mubr.f32.mxu0 %v2875_v0  ;;  %1106 = vmatprep.mubr.f32.mxu1 %v2875_v0 }
 0x256   :  { %2258 = vmatpush1.bf16.msra.mxu0 %v2979_v28  ;;  %2290 = vmatpush1.bf16.msra.mxu1 %v2986_v32 }
 0x257   :  { %2260 = vmatprep.subr.bf16.mxu0 %v2990_v36  ;;  %2292 = vmatprep.subr.bf16.mxu1 %v2992_v37 }
 0x25a   :  { %2262 = vmatpush1.bf16.msra.mxu0 %v2996_v41  ;;  %2294 = vmatpush1.bf16.msra.mxu1 %v3003_v45 }
 0x25b   :  { %2264 = vmatprep.subr.bf16.mxu0 %v3007_v49  ;;  %2296 = vmatprep.subr.bf16.mxu1 %v3011_v53 }
 0x25e   :  { %2266 = vmatpush1.bf16.msra.mxu0 %v3015_v56  ;;  %2298 = vmatpush1.bf16.msra.mxu1 %v3019_v60 }
 0x25f   :  { %2268 = vmatprep.subr.bf16.mxu0 %v3026_v1  ;;  %2300 = vmatprep.subr.bf16.mxu1 %v3030_v4 }
 0x262   :  { %2270 = vmatpush1.bf16.msra.mxu0 %v3034_v7  ;;  %2302 = vmatpush1.bf16.msra.mxu1 %v3038_v12 }
 0x263   :  { %2272 = vmatprep.subr.bf16.mxu0 %v3045_v17  ;;  %2304 = vmatprep.subr.bf16.mxu1 %v3049_v21 }
 0x266   :  { %2274 = vmatpush1.bf16.msra.mxu0 %v3053_v26  ;;  %2306 = vmatpush1.bf16.msra.mxu1 %v3057_v30 }
 0x267   :  { %2276 = vmatprep.subr.bf16.mxu0 %v3064_v35  ;;  %2308 = vmatprep.subr.bf16.mxu1 %v3068_v40 }
 0x26a   :  { %2278 = vmatpush1.bf16.msra.mxu0 %v3072_v44  ;;  %2310 = vmatpush1.bf16.msra.mxu1 %v3076_v48 }
 0x26b   :  { %2280 = vmatprep.subr.bf16.mxu0 %v3083_v54  ;;  %2312 = vmatprep.subr.bf16.mxu1 %v3087_v58 }
 0x26e   :  { %2282 = vmatpush1.bf16.msra.mxu0 %v3091_v59  ;;  %2314 = vmatpush1.bf16.msra.mxu1 %v3095_v61 }
 0x26f   :  { %2316 = vmatprep.subr.bf16.mxu0 %v2957_v10  ;;  %2348 = vmatprep.subr.bf16.mxu1 %v2959_v11 }
 0x324   :  { %v860_v2 = vpop.f32.mrb[4].mxu0  ;;  %v931_v13 = vpop.f32.mrb[4].mxu1 }
 0x325   :  { %v2599_v14 = vadd.f32 %v860_v2, %v3145_v6  ;;  %v862_v16 = vpop.f32.mrb[5].mxu0  ;;  %v933_v18 = vpop.f32.mrb[5].mxu1  ;;  %v2615_v33 = vadd.f32 %v931_v13, %v3154_v34 }
 0x326   :  { %v2600_v20 = vadd.f32 %v862_v16, %v3147_v8  ;;  %v2616_v27 = vadd.f32 %v933_v18, %v3151_v29 }
 0x327   :  { %v1988_v22 = vmul.f32 -1.442695, %v2599_v14 }
 0x328   :  { %v1989_v25 = vmul.f32 -1.442695, %v2600_v20  ;;  %v1990_v31 = vmul.f32 -1.442695, %v2616_v27 }
 0x329   :  { %2701 = vpow2.f32 %v1988_v22 }
 0x32a   :  { %2703 = vpow2.f32 %v1989_v25 }
 0x32b   :  { %2705 = vpow2.f32 %v1990_v31 }
 0x32c   :  { %2707 = vtanh.f32 %v2615_v33 }
 0x333   :  { %v2702_v38 = vpop.eup %2701 }
 0x334   :  { %v2704_v39 = vpop.eup %2703  ;;  %v943_v42 = vadd.f32 1.0, %v2702_v38 }
 0x335   :  { %v949_v43 = vadd.f32 1.0, %v2704_v39  ;;  %v2706_v46 = vpop.eup %2705 }
 0x336   :  { %2709 = vrcp.f32 %v943_v42  ;;  %v2708_v47 = vpop.eup %2707  ;;  %v956_v55 = vadd.f32 1.0, %v2706_v46 }
 0x337   :  { %2711 = vrcp.f32 %v949_v43 }
 0x338   :  { %2713 = vrcp.f32 %v956_v55 }
 0x340   :  { %v2710_v50 = vpop.eup %2709 }
 0x341   :  { %v2712_v51 = vpop.eup %2711  ;;  %v960_v52 = vmul.f32 %v2710_v50, %v2708_v47 }
 0x342   :  { %v959_v57 = vmul.f32 %v2712_v51, %v3199_v63  ;;  %v2714_v3 = vpop.eup %2713 }
 0x344   :  { %v3241_v62 = vadd.f32 %v960_v52, %v959_v57 }
 0x346   :  { %2715 = vtanh.f32 %v3241_v62 }
 0x350   :  { %v2716_v5 = vpop.eup %2715 }
 0x351   :  { %v963_v9 = vmul.f32 %v2716_v5, %v2714_v3 }
 0x353   :  { %1036 = vmatmul.mubr.f32.vlgmr.msra.gmra.mrb[6].mxu0 %v963_v9  ;;  %1107 = vmatmul.mubr.f32.vlgmr.msra.gmra.mrb[6].mxu1 %v963_v9 }
 0x354   :  { %2318 = vmatpush1.bf16.msra.mxu0 %v2961_v15  ;;  %2350 = vmatpush1.bf16.msra.mxu1 %v2970_v19 }
 0x355   :  { %2320 = vmatprep.subr.bf16.mxu0 %v2973_v23  ;;  %2352 = vmatprep.subr.bf16.mxu1 %v2975_v24 }
 0x356   :  { %1212 = vmatprep.mubr.f32.mxu0 %v2875_v0  ;;  %1283 = vmatprep.mubr.f32.mxu1 %v2875_v0 }
 0x358   :  { %2322 = vmatpush1.bf16.msra.mxu0 %v2979_v28  ;;  %2354 = vmatpush1.bf16.msra.mxu1 %v2986_v32 }
 0x359   :  { %2324 = vmatprep.subr.bf16.mxu0 %v2990_v36  ;;  %2356 = vmatprep.subr.bf16.mxu1 %v2992_v37 }
 0x35c   :  { %2326 = vmatpush1.bf16.msra.mxu0 %v2996_v41  ;;  %2358 = vmatpush1.bf16.msra.mxu1 %v3003_v45 }
 0x35d   :  { %2328 = vmatprep.subr.bf16.mxu0 %v3007_v49  ;;  %2360 = vmatprep.subr.bf16.mxu1 %v3011_v53 }
 0x360   :  { %2330 = vmatpush1.bf16.msra.mxu0 %v3015_v56  ;;  %2362 = vmatpush1.bf16.msra.mxu1 %v3019_v60 }
 0x361   :  { %2332 = vmatprep.subr.bf16.mxu0 %v3026_v1  ;;  %2364 = vmatprep.subr.bf16.mxu1 %v3030_v4 }
 0x364   :  { %2334 = vmatpush1.bf16.msra.mxu0 %v3034_v7  ;;  %2366 = vmatpush1.bf16.msra.mxu1 %v3038_v12 }
 0x365   :  { %2336 = vmatprep.subr.bf16.mxu0 %v3045_v17  ;;  %2368 = vmatprep.subr.bf16.mxu1 %v3049_v21 }
 0x368   :  { %2338 = vmatpush1.bf16.msra.mxu0 %v3053_v26  ;;  %2370 = vmatpush1.bf16.msra.mxu1 %v3057_v30 }
 0x369   :  { %2340 = vmatprep.subr.bf16.mxu0 %v3064_v35  ;;  %2372 = vmatprep.subr.bf16.mxu1 %v3068_v40 }
 0x36c   :  { %2342 = vmatpush1.bf16.msra.mxu0 %v3072_v44  ;;  %2374 = vmatpush1.bf16.msra.mxu1 %v3076_v48 }
 0x36d   :  { %2344 = vmatprep.subr.bf16.mxu0 %v3083_v54  ;;  %2376 = vmatprep.subr.bf16.mxu1 %v3087_v58 }
 0x370   :  { %2346 = vmatpush1.bf16.msra.mxu0 %v3091_v59  ;;  %2378 = vmatpush1.bf16.msra.mxu1 %v3095_v61 }
 0x371   :  { %2380 = vmatprep.subr.bf16.mxu0 %v2957_v10  ;;  %2412 = vmatprep.subr.bf16.mxu1 %v2959_v11 }
 0x426   :  { %v1037_v63 = vpop.f32.mrb[6].mxu0  ;;  %v1108_v2 = vpop.f32.mrb[6].mxu1 }
 0x427   :  { %v2601_v13 = vadd.f32 %v1037_v63, %v3145_v6  ;;  %v1039_v14 = vpop.f32.mrb[7].mxu0  ;;  %v1110_v16 = vpop.f32.mrb[7].mxu1  ;;  %v2617_v31 = vadd.f32 %v1108_v2, %v3154_v34 }
 0x428   :  { %v2602_v18 = vadd.f32 %v1039_v14, %v3147_v8  ;;  %v2618_v25 = vadd.f32 %v1110_v16, %v3151_v29 }
 0x429   :  { %v1991_v20 = vmul.f32 -1.442695, %v2601_v13 }
 0x42a   :  { %v1992_v22 = vmul.f32 -1.442695, %v2602_v18  ;;  %v1993_v27 = vmul.f32 -1.442695, %v2618_v25 }
 0x42b   :  { %2717 = vpow2.f32 %v1991_v20 }
 0x42c   :  { %2719 = vpow2.f32 %v1992_v22 }
 0x42d   :  { %2721 = vpow2.f32 %v1993_v27 }
 0x42e   :  { %2723 = vtanh.f32 %v2617_v31 }
 0x435   :  { %v2718_v33 = vpop.eup %2717 }
 0x436   :  { %v2720_v38 = vpop.eup %2719  ;;  %v1120_v39 = vadd.f32 1.0, %v2718_v33 }
 0x437   :  { %v1126_v42 = vadd.f32 1.0, %v2720_v38  ;;  %v2722_v43 = vpop.eup %2721 }
 0x438   :  { %2725 = vrcp.f32 %v1120_v39  ;;  %v2724_v46 = vpop.eup %2723  ;;  %v1133_v52 = vadd.f32 1.0, %v2722_v43 }
 0x439   :  { %2727 = vrcp.f32 %v1126_v42 }
 0x43a   :  { %2729 = vrcp.f32 %v1133_v52 }
 0x442   :  { %v2726_v47 = vpop.eup %2725 }
 0x443   :  { %v2728_v50 = vpop.eup %2727  ;;  %v1137_v51 = vmul.f32 %v2726_v47, %v2724_v46 }
 0x444   :  { %v1136_v55 = vmul.f32 %v2728_v50, %v3241_v62  ;;  %v2730_v3 = vpop.eup %2729 }
 0x446   :  { %v3283_v57 = vadd.f32 %v1137_v51, %v1136_v55 }
 0x448   :  { %2731 = vtanh.f32 %v3283_v57 }
 0x452   :  { %v2732_v5 = vpop.eup %2731 }
 0x453   :  { %v1140_v9 = vmul.f32 %v2732_v5, %v2730_v3 }
 0x455   :  { %1213 = vmatmul.mubr.f32.vlgmr.msra.gmra.mrb[8].mxu0 %v1140_v9  ;;  %1284 = vmatmul.mubr.f32.vlgmr.msra.gmra.mrb[8].mxu1 %v1140_v9 }
 0x456   :  { %2382 = vmatpush1.bf16.msra.mxu0 %v2961_v15  ;;  %2414 = vmatpush1.bf16.msra.mxu1 %v2970_v19 }
 0x457   :  { %2384 = vmatprep.subr.bf16.mxu0 %v2973_v23  ;;  %2416 = vmatprep.subr.bf16.mxu1 %v2975_v24 }
 0x458   :  { %1389 = vmatprep.mubr.f32.mxu0 %v2875_v0  ;;  %1460 = vmatprep.mubr.f32.mxu1 %v2875_v0 }
 0x45a   :  { %2386 = vmatpush1.bf16.msra.mxu0 %v2979_v28  ;;  %2418 = vmatpush1.bf16.msra.mxu1 %v2986_v32 }
 0x45b   :  { %2388 = vmatprep.subr.bf16.mxu0 %v2990_v36  ;;  %2420 = vmatprep.subr.bf16.mxu1 %v2992_v37 }
 0x45e   :  { %2390 = vmatpush1.bf16.msra.mxu0 %v2996_v41  ;;  %2422 = vmatpush1.bf16.msra.mxu1 %v3003_v45 }
 0x45f   :  { %2392 = vmatprep.subr.bf16.mxu0 %v3007_v49  ;;  %2424 = vmatprep.subr.bf16.mxu1 %v3011_v53 }
 0x462   :  { %2394 = vmatpush1.bf16.msra.mxu0 %v3015_v56  ;;  %2426 = vmatpush1.bf16.msra.mxu1 %v3019_v60 }
 0x463   :  { %2396 = vmatprep.subr.bf16.mxu0 %v3026_v1  ;;  %2428 = vmatprep.subr.bf16.mxu1 %v3030_v4 }
 0x466   :  { %2398 = vmatpush1.bf16.msra.mxu0 %v3034_v7  ;;  %2430 = vmatpush1.bf16.msra.mxu1 %v3038_v12 }
 0x467   :  { %2400 = vmatprep.subr.bf16.mxu0 %v3045_v17  ;;  %2432 = vmatprep.subr.bf16.mxu1 %v3049_v21 }
 0x46a   :  { %2402 = vmatpush1.bf16.msra.mxu0 %v3053_v26  ;;  %2434 = vmatpush1.bf16.msra.mxu1 %v3057_v30 }
 0x46b   :  { %2404 = vmatprep.subr.bf16.mxu0 %v3064_v35  ;;  %2436 = vmatprep.subr.bf16.mxu1 %v3068_v40 }
 0x46e   :  { %2406 = vmatpush1.bf16.msra.mxu0 %v3072_v44  ;;  %2438 = vmatpush1.bf16.msra.mxu1 %v3076_v48 }
 0x46f   :  { %2408 = vmatprep.subr.bf16.mxu0 %v3083_v54  ;;  %2440 = vmatprep.subr.bf16.mxu1 %v3087_v58 }
 0x472   :  { %2410 = vmatpush1.bf16.msra.mxu0 %v3091_v59  ;;  %2442 = vmatpush1.bf16.msra.mxu1 %v3095_v61 }
 0x473   :  { %2444 = vmatprep.subr.bf16.mxu0 %v2957_v10  ;;  %2476 = vmatprep.subr.bf16.mxu1 %v2959_v11 }
 0x528   :  { %v1214_v62 = vpop.f32.mrb[8].mxu0  ;;  %v1285_v63 = vpop.f32.mrb[8].mxu1 }
 0x529   :  { %v2603_v2 = vadd.f32 %v1214_v62, %v3145_v6  ;;  %v1216_v13 = vpop.f32.mrb[9].mxu0  ;;  %v1287_v14 = vpop.f32.mrb[9].mxu1  ;;  %v2619_v27 = vadd.f32 %v1285_v63, %v3154_v34 }
 0x52a   :  { %v2604_v16 = vadd.f32 %v1216_v13, %v3147_v8  ;;  %v2620_v22 = vadd.f32 %v1287_v14, %v3151_v29 }
 0x52b   :  { %v1994_v18 = vmul.f32 -1.442695, %v2603_v2 }
 0x52c   :  { %v1995_v20 = vmul.f32 -1.442695, %v2604_v16  ;;  %v1996_v25 = vmul.f32 -1.442695, %v2620_v22 }
 0x52d   :  { %2733 = vpow2.f32 %v1994_v18 }
 0x52e   :  { %2735 = vpow2.f32 %v1995_v20 }
 0x52f   :  { %2737 = vpow2.f32 %v1996_v25 }
 0x530   :  { %2739 = vtanh.f32 %v2619_v27 }
 0x537   :  { %v2734_v31 = vpop.eup %2733 }
 0x538   :  { %v2736_v33 = vpop.eup %2735  ;;  %v1297_v38 = vadd.f32 1.0, %v2734_v31 }
 0x539   :  { %v1303_v39 = vadd.f32 1.0, %v2736_v33  ;;  %v2738_v42 = vpop.eup %2737 }
 0x53a   :  { %2741 = vrcp.f32 %v1297_v38  ;;  %v2740_v43 = vpop.eup %2739  ;;  %v1310_v51 = vadd.f32 1.0, %v2738_v42 }
 0x53b   :  { %2743 = vrcp.f32 %v1303_v39 }
 0x53c   :  { %2745 = vrcp.f32 %v1310_v51 }
 0x544   :  { %v2742_v46 = vpop.eup %2741 }
 0x545   :  { %v2744_v47 = vpop.eup %2743  ;;  %v1314_v50 = vmul.f32 %v2742_v46, %v2740_v43 }
 0x546   :  { %v1313_v52 = vmul.f32 %v2744_v47, %v3283_v57  ;;  %v2746_v3 = vpop.eup %2745 }
 0x548   :  { %v3325_v55 = vadd.f32 %v1314_v50, %v1313_v52 }
 0x54a   :  { %2747 = vtanh.f32 %v3325_v55 }
 0x554   :  { %v2748_v5 = vpop.eup %2747 }
 0x555   :  { %v1317_v9 = vmul.f32 %v2748_v5, %v2746_v3  ;;  %v1852_v5 = vld [vmem:[#allocation6 + $0x18] sm:$0xff] }
 0x557   :  { %1390 = vmatmul.mubr.f32.vlgmr.msra.gmra.mrb[10].mxu0 %v1317_v9  ;;  %1461 = vmatmul.mubr.f32.vlgmr.msra.gmra.mrb[10].mxu1 %v1317_v9 }
 0x558   :  { %2446 = vmatpush1.bf16.msra.mxu0 %v2961_v15  ;;  %2478 = vmatpush1.bf16.msra.mxu1 %v2970_v19 }
 0x559   :  { %2448 = vmatprep.subr.bf16.mxu0 %v2973_v23  ;;  %2480 = vmatprep.subr.bf16.mxu1 %v2975_v24 }
 0x55a   :  { %1566 = vmatprep.mubr.f32.mxu0 %v2875_v0  ;;  %1637 = vmatprep.mubr.f32.mxu1 %v2875_v0 }
 0x55c   :  { %2450 = vmatpush1.bf16.msra.mxu0 %v2979_v28  ;;  %2482 = vmatpush1.bf16.msra.mxu1 %v2986_v32 }
 0x55d   :  { %2452 = vmatprep.subr.bf16.mxu0 %v2990_v36  ;;  %2484 = vmatprep.subr.bf16.mxu1 %v2992_v37 }
 0x560   :  { %2454 = vmatpush1.bf16.msra.mxu0 %v2996_v41  ;;  %2486 = vmatpush1.bf16.msra.mxu1 %v3003_v45 }
 0x561   :  { %2456 = vmatprep.subr.bf16.mxu0 %v3007_v49  ;;  %2488 = vmatprep.subr.bf16.mxu1 %v3011_v53 }
 0x564   :  { %2458 = vmatpush1.bf16.msra.mxu0 %v3015_v56  ;;  %2490 = vmatpush1.bf16.msra.mxu1 %v3019_v60 }
 0x565   :  { %2460 = vmatprep.subr.bf16.mxu0 %v3026_v1  ;;  %2492 = vmatprep.subr.bf16.mxu1 %v3030_v4 }
 0x568   :  { %2462 = vmatpush1.bf16.msra.mxu0 %v3034_v7  ;;  %2494 = vmatpush1.bf16.msra.mxu1 %v3038_v12 }
 0x569   :  { %2464 = vmatprep.subr.bf16.mxu0 %v3045_v17  ;;  %2496 = vmatprep.subr.bf16.mxu1 %v3049_v21 }
 0x56c   :  { %2466 = vmatpush1.bf16.msra.mxu0 %v3053_v26  ;;  %2498 = vmatpush1.bf16.msra.mxu1 %v3057_v30 }
 0x56d   :  { %2468 = vmatprep.subr.bf16.mxu0 %v3064_v35  ;;  %2500 = vmatprep.subr.bf16.mxu1 %v3068_v40 }
 0x570   :  { %2470 = vmatpush1.bf16.msra.mxu0 %v3072_v44  ;;  %2502 = vmatpush1.bf16.msra.mxu1 %v3076_v48 }
 0x571   :  { %2472 = vmatprep.subr.bf16.mxu0 %v3083_v54  ;;  %2504 = vmatprep.subr.bf16.mxu1 %v3087_v58 }
 0x574   :  { %2474 = vmatpush1.bf16.msra.mxu0 %v3091_v59  ;;  %2506 = vmatpush1.bf16.msra.mxu1 %v3095_v61 }
 0x575   :  { %2508 = vmatprep.subr.bf16.mxu0 %v2957_v10  ;;  %2540 = vmatprep.subr.bf16.mxu1 %v2959_v11 }
 0x62a   :  { %v1391_v57 = vpop.f32.mrb[10].mxu0  ;;  %v1462_v62 = vpop.f32.mrb[10].mxu1 }
 0x62b   :  { %v2605_v63 = vadd.f32 %v1391_v57, %v3145_v6  ;;  %v1393_v2 = vpop.f32.mrb[11].mxu0  ;;  %v1464_v13 = vpop.f32.mrb[11].mxu1  ;;  %v2621_v25 = vadd.f32 %v1462_v62, %v3154_v34  ;;  %v1853_v57 = vld [vmem:[#allocation6 + $0x20] sm:$0xff]  ;;  %v1854_v62 = vld [vmem:[#allocation6 + $0x28] sm:$0xff] }
 0x62c   :  { %v2606_v14 = vadd.f32 %v1393_v2, %v3147_v8  ;;  %v2622_v20 = vadd.f32 %v1464_v13, %v3151_v29  ;;  %v1855_v2 = vld [vmem:[#allocation6 + $0x30] sm:$0xff]  ;;  %v1856_v13 = vld [vmem:[#allocation6 + $0x38] sm:$0xff] }
 0x62d   :  { %v1997_v16 = vmul.f32 -1.442695, %v2605_v63  ;;  %v2578_v63 = vpack.c.bf16 %v1854_v62, %v1853_v57 }
 0x62e   :  { %v1998_v18 = vmul.f32 -1.442695, %v2606_v14  ;;  %v1999_v22 = vmul.f32 -1.442695, %v2622_v20  ;;  %v2581_v14 = vpack.c.bf16 %v1856_v13, %v1855_v2 }
 0x62f   :  { %2749 = vpow2.f32 %v1997_v16  ;;  %v1857_v16 = vld [vmem:[#allocation6 + $0x40] sm:$0xff] }
 0x630   :  { %2751 = vpow2.f32 %v1998_v18  ;;  %v1858_v18 = vld [vmem:[#allocation6 + $0x48] sm:$0xff] }
 0x631   :  { %2753 = vpow2.f32 %v1999_v22  ;;  %v2584_v20 = vpack.c.bf16 %v1858_v18, %v1857_v16  ;;  %v1859_v22 = vld [vmem:[#allocation6 + $0x50] sm:$0xff] }
 0x632   :  { %2755 = vtanh.f32 %v2621_v25  ;;  %v1860_v25 = vld [vmem:[#allocation6 + $0x58] sm:$0xff] }
 0x639   :  { %v2750_v10 = vpop.eup %2749 }
 0x63a   :  { %v2752_v27 = vpop.eup %2751  ;;  %v1474_v11 = vadd.f32 1.0, %v2750_v10  ;;  %v1861_v10 = vld [vmem:[#allocation6 + $0x60] sm:$0xff] }
 0x63b   :  { %v1480_v31 = vadd.f32 1.0, %v2752_v27  ;;  %v2754_v33 = vpop.eup %2753  ;;  %v2587_v27 = vpack.c.bf16 %v1860_v25, %v1859_v22 }
 0x63c   :  { %2757 = vrcp.f32 %v1474_v11  ;;  %v2756_v38 = vpop.eup %2755  ;;  %v1487_v46 = vadd.f32 1.0, %v2754_v33  ;;  %v1862_v11 = vld [vmem:[#allocation6 + $0x68] sm:$0xff]  ;;  %v1863_v33 = vld [vmem:[#allocation6 + $0x70] sm:$0xff] }
 0x63d   :  { %2759 = vrcp.f32 %v1480_v31  ;;  %v2590_v31 = vpack.c.bf16 %v1862_v11, %v1861_v10 }
 0x63e   :  { %2761 = vrcp.f32 %v1487_v46 }
 0x646   :  { %v2758_v39 = vpop.eup %2757 }
 0x647   :  { %v2760_v42 = vpop.eup %2759  ;;  %v1491_v43 = vmul.f32 %v2758_v39, %v2756_v38  ;;  %v1864_v38 = vld [vmem:[#allocation6 + $0x78] sm:$0xff] }
 0x648   :  { %v1490_v47 = vmul.f32 %v2760_v42, %v3325_v55  ;;  %v2762_v51 = vpop.eup %2761  ;;  %v1851_v55 = vld [vmem:[#allocation6 + $0x10] sm:$0xff]  ;;  %v2593_v39 = vpack.c.bf16 %v1864_v38, %v1863_v33 }
 0x649   :  { %v2575_v9 = vpack.c.bf16 %v1852_v5, %v1851_v55 }
 0x64a   :  { %v3367_v50 = vadd.f32 %v1491_v43, %v1490_v47 }
 0x64c   :  { %2763 = vtanh.f32 %v3367_v50 }
 0x656   :  { %v2764_v52 = vpop.eup %2763 }
 0x657   :  { %v1494_v3 = vmul.f32 %v2764_v52, %v2762_v51 }
 0x659   :  { %1567 = vmatmul.mubr.f32.vlgmr.msra.gmra.mrb[12].mxu0 %v1494_v3  ;;  %1638 = vmatmul.mubr.f32.vlgmr.msra.gmra.mrb[12].mxu1 %v1494_v3 }
 0x65a   :  { %2510 = vmatpush1.bf16.msra.mxu0 %v2961_v15  ;;  %2542 = vmatpush1.bf16.msra.mxu1 %v2970_v19 }
 0x65b   :  { %2512 = vmatprep.subr.bf16.mxu0 %v2973_v23  ;;  %2544 = vmatprep.subr.bf16.mxu1 %v2975_v24 }
 0x65c   :  { %1743 = vmatprep.mubr.f32.mxu0 %v2875_v0  ;;  %1814 = vmatprep.mubr.f32.mxu1 %v2875_v0 }
 0x65e   :  { %2514 = vmatpush1.bf16.msra.mxu0 %v2979_v28  ;;  %2546 = vmatpush1.bf16.msra.mxu1 %v2986_v32 }
 0x65f   :  { %2516 = vmatprep.subr.bf16.mxu0 %v2990_v36  ;;  %2548 = vmatprep.subr.bf16.mxu1 %v2992_v37 }
 0x662   :  { %2518 = vmatpush1.bf16.msra.mxu0 %v2996_v41  ;;  %2550 = vmatpush1.bf16.msra.mxu1 %v3003_v45 }
 0x663   :  { %2520 = vmatprep.subr.bf16.mxu0 %v3007_v49  ;;  %2552 = vmatprep.subr.bf16.mxu1 %v3011_v53 }
 0x666   :  { %2522 = vmatpush1.bf16.msra.mxu0 %v3015_v56  ;;  %2554 = vmatpush1.bf16.msra.mxu1 %v3019_v60 }
 0x667   :  { %2524 = vmatprep.subr.bf16.mxu0 %v3026_v1  ;;  %2556 = vmatprep.subr.bf16.mxu1 %v3030_v4 }
 0x66a   :  { %2526 = vmatpush1.bf16.msra.mxu0 %v3034_v7  ;;  %2558 = vmatpush1.bf16.msra.mxu1 %v3038_v12 }
 0x66b   :  { %2528 = vmatprep.subr.bf16.mxu0 %v3045_v17  ;;  %2560 = vmatprep.subr.bf16.mxu1 %v3049_v21 }
 0x66e   :  { %2530 = vmatpush1.bf16.msra.mxu0 %v3053_v26  ;;  %2562 = vmatpush1.bf16.msra.mxu1 %v3057_v30 }
 0x66f   :  { %2532 = vmatprep.subr.bf16.mxu0 %v3064_v35  ;;  %2564 = vmatprep.subr.bf16.mxu1 %v3068_v40 }
 0x672   :  { %2534 = vmatpush1.bf16.msra.mxu0 %v3072_v44  ;;  %2566 = vmatpush1.bf16.msra.mxu1 %v3076_v48 }
 0x673   :  { %2536 = vmatprep.subr.bf16.mxu0 %v3083_v54  ;;  %2568 = vmatprep.subr.bf16.mxu1 %v3087_v58  ;;  %v1849_v54 = vld [vmem:[#allocation6] sm:$0xff]  ;;  %v1850_v58 = vld [vmem:[#allocation6 + $0x8] sm:$0xff] }
 0x676   :  { %2538 = vmatpush1.bf16.msra.mxu0 %v3091_v59  ;;  %2570 = vmatpush1.bf16.msra.mxu1 %v3095_v61  ;;  %v2572_v59 = vpack.c.bf16 %v1850_v58, %v1849_v54  ;;  %v2876_v61 = vmov 0.0|0.0  }
 0x677   :  { %2571 = vmatprep.subr.bf16.mxu0 %v2876_v61 }
 0x72c   :  { %v1568_v15 = vpop.f32.mrb[12].mxu0  ;;  %v1639_v19 = vpop.f32.mrb[12].mxu1 }
 0x72d   :  { %v2607_v23 = vadd.f32 %v1568_v15, %v3145_v6  ;;  %v1570_v24 = vpop.f32.mrb[13].mxu0  ;;  %v1641_v28 = vpop.f32.mrb[13].mxu1  ;;  %v2623_v49 = vadd.f32 %v1639_v19, %v3154_v34 }
 0x72e   :  { %v2608_v32 = vadd.f32 %v1570_v24, %v3147_v8  ;;  %v2624_v41 = vadd.f32 %v1641_v28, %v3151_v29 }
 0x72f   :  { %v2000_v36 = vmul.f32 -1.442695, %v2607_v23 }
 0x730   :  { %v2001_v37 = vmul.f32 -1.442695, %v2608_v32  ;;  %v2002_v45 = vmul.f32 -1.442695, %v2624_v41 }
 0x731   :  { %2765 = vpow2.f32 %v2000_v36 }
 0x732   :  { %2767 = vpow2.f32 %v2001_v37 }
 0x733   :  { %2769 = vpow2.f32 %v2002_v45 }
 0x734   :  { %2771 = vtanh.f32 %v2623_v49 }
 0x73b   :  { %v2766_v53 = vpop.eup %2765 }
 0x73c   :  { %v2768_v56 = vpop.eup %2767  ;;  %v1651_v60 = vadd.f32 1.0, %v2766_v53 }
 0x73d   :  { %v1657_v1 = vadd.f32 1.0, %v2768_v56  ;;  %v2770_v4 = vpop.eup %2769 }
 0x73e   :  { %2773 = vrcp.f32 %v1651_v60  ;;  %v2772_v7 = vpop.eup %2771  ;;  %v1664_v26 = vadd.f32 1.0, %v2770_v4  ;;  %v2006_v60 = vld [vmem:[%s3436_s5] ss:$0 sm:$0xff] }
 0x73f   :  { %2775 = vrcp.f32 %v1657_v1 }
 0x740   :  { %2777 = vrcp.f32 %v1664_v26 }
 0x748   :  { %v2774_v12 = vpop.eup %2773 }
 0x749   :  { %v2776_v17 = vpop.eup %2775  ;;  %v1668_v21 = vmul.f32 %v2774_v12, %v2772_v7 }
 0x74a   :  { %v1667_v30 = vmul.f32 %v2776_v17, %v3367_v50  ;;  %v2778_v40 = vpop.eup %2777 }
 0x74c   :  { %v3407_v35 = vadd.f32 %v1668_v21, %v1667_v30 }
 0x74e   :  { %2779 = vtanh.f32 %v3407_v35 }
 0x758   :  { %v2780_v44 = vpop.eup %2779 }
 0x759   :  { %v1671_v48 = vmul.f32 %v2780_v44, %v2778_v40 }
 0x75b   :  { %1744 = vmatmul.mubr.f32.vlgmr.msra.gmra.mrb[14].mxu0 %v1671_v48  ;;  %1815 = vmatmul.mubr.f32.vlgmr.msra.gmra.mrb[14].mxu1 %v1671_v48 }
 0x75c   :  { %2573 = vmatpush3.bf16.msra.mxu0 %v2572_v59  ;;  %2056 = vmatprep.mubr.msk.f32.mxu0 %vm2877_vm1, %v2875_v0 }
 0x75d   :  { %2574 = vmatprep.subr.bf16.mxu0 %v2876_v61 }
 0x760   :  { %2576 = vmatpush3.bf16.msra.mxu0 %v2575_v9 }
 0x761   :  { %2577 = vmatprep.subr.bf16.mxu0 %v2876_v61 }
 0x764   :  { %2579 = vmatpush3.bf16.msra.mxu0 %v2578_v63 }
 0x765   :  { %2580 = vmatprep.subr.bf16.mxu0 %v2876_v61 }
 0x768   :  { %2582 = vmatpush3.bf16.msra.mxu0 %v2581_v14 }
 0x769   :  { %2583 = vmatprep.subr.bf16.mxu0 %v2876_v61 }
 0x76c   :  { %2585 = vmatpush3.bf16.msra.mxu0 %v2584_v20 }
 0x76d   :  { %2586 = vmatprep.subr.bf16.mxu0 %v2876_v61 }
 0x770   :  { %2588 = vmatpush3.bf16.msra.mxu0 %v2587_v27 }
 0x771   :  { %2589 = vmatprep.subr.bf16.mxu0 %v2876_v61 }
 0x774   :  { %2591 = vmatpush3.bf16.msra.mxu0 %v2590_v31 }
 0x775   :  { %2592 = vmatprep.subr.bf16.mxu0 %v2876_v61 }
 0x778   :  { %2594 = vmatpush3.bf16.msra.mxu0 %v2593_v39 }
 0x82e   :  { %v1745_v42 = vpop.f32.mrb[14].mxu0  ;;  %v1816_v43 = vpop.f32.mrb[14].mxu1 }
 0x82f   :  { %v2609_v46 = vadd.f32 %v1745_v42, %v3145_v6  ;;  %v1747_v47 = vpop.f32.mrb[15].mxu0  ;;  %v1818_v50 = vpop.f32.mrb[15].mxu1  ;;  %v2625_v19 = vadd.f32 %v1816_v43, %v3154_v34 }
 0x830   :  { %v2610_v51 = vadd.f32 %v1747_v47, %v3147_v8  ;;  %v2626_v0 = vadd.f32 %v1818_v50, %v3151_v29 }
 0x831   :  { %v2003_v52 = vmul.f32 -1.442695, %v2609_v46 }
 0x832   :  { %v2004_v3 = vmul.f32 -1.442695, %v2610_v51  ;;  %v2005_v15 = vmul.f32 -1.442695, %v2626_v0 }
 0x833   :  { %2781 = vpow2.f32 %v2003_v52 }
 0x834   :  { %2783 = vpow2.f32 %v2004_v3 }
 0x835   :  { %2785 = vpow2.f32 %v2005_v15 }
 0x836   :  { %2787 = vtanh.f32 %v2625_v19 }
 0x83d   :  { %v2782_v23 = vpop.eup %2781 }
 0x83e   :  { %v2784_v24 = vpop.eup %2783  ;;  %v1828_v28 = vadd.f32 1.0, %v2782_v23 }
 0x83f   :  { %v1834_v32 = vadd.f32 1.0, %v2784_v24  ;;  %v2786_v6 = vpop.eup %2785 }
 0x840   :  { %2789 = vrcp.f32 %v1828_v28  ;;  %v2788_v36 = vpop.eup %2787  ;;  %v1841_v45 = vadd.f32 1.0, %v2786_v6 }
 0x841   :  { %2791 = vrcp.f32 %v1834_v32 }
 0x842   :  { %2793 = vrcp.f32 %v1841_v45 }
 0x84a   :  { %v2790_v8 = vpop.eup %2789 }
 0x84b   :  { %v2792_v37 = vpop.eup %2791  ;;  %v1845_v41 = vmul.f32 %v2790_v8, %v2788_v36 }
 0x84c   :  { %v1844_v49 = vmul.f32 %v2792_v37, %v3407_v35  ;;  %v2794_v34 = vpop.eup %2793 }
 0x84e   :  { %v1846_v29 = vadd.f32 %v1845_v41, %v1844_v49 }
 0x850   :  { %2795 = vtanh.f32 %v1846_v29 }
 0x85a   :  { %v2796_v53 = vpop.eup %2795 }
 0x85b   :  { %v1848_v56 = vmul.f32 %v2796_v53, %v2794_v34 }
 0x85d   :  { %2057 = vmatmul.mubr.f32.vlgmr.msra.gmra.mrb[16].mxu0 %v1848_v56 }
 0x930   :  { %v1938_v1 = vpop.f32.mrb[16].mxu0 }
 0x931   :  { %v1939_v4 = vadd.f32 %v2006_v60, %v1938_v1  ;;  %v2058_v7 = vpop.f32.mrb[17].mxu0 }
 0x933   :  { %1942 = vst [vmem:[#allocation8] sm:$0xff] %v1939_v4 }
 0x934   :  { %2852 = shalt.err (!%p2849_p6)
}
 0x935   :  { %s2853_s28 = scalar_lea.hbm %s3437_s6, 128 }
 0x936   :  { %p2854_p7 = scmp.ne.s32.totalorder %s3437_s6, %s2853_s28  ;;  %p2857_p8 = scmp.lt.u32.totalorder %s2853_s28, %s3437_s6 }
 0x938   :  { %p2859_p9 = pnand %p2857_p8, %p2854_p7 }
 0x93a   :  { %2862 = shalt.err (!%p2859_p9)
}
 0x93b   :  { %1952 = dma.vmem_to_hbm [thread:$0]  %s1950_s24, 128, %s3437_s6, [#allocation5]  }
 0x93c   :  { %2867 = dma.done.wait [#allocation5], 128  }
 0x93d   :  { %2868 = vsyncadd [#allocation5], 4294967168 }
 0x93e   :  { %1956 = vsyncpa [#allocation4], 1 }
 0x93f   :  { %1957 = vsyncpa [#allocation7], 1 }
 0x940   :  { %1958 = vsyncpa [#allocation5], 1 }

</bundles_post_ra>
